<compile_context>
chip_gen: v5e
topology: v5e:2x2
jax: 0.10.0
libtpu: 0.0.40
codegen_flags: <defaults>
</compile_context>

<pallas_src>
import numpy as np
import jax
import jax.numpy as jnp
from jax.experimental import pallas as pl
from jax.experimental.pallas import tpu as pltpu


# ----------------------------- small helpers -----------------------------

def _ln(x, eps=1e-6):
    # LayerNorm(elementwise_affine=False, eps=1e-6), biased variance like torch
    mu = jnp.mean(x, axis=-1, keepdims=True)
    xc = x - mu
    var = jnp.mean(xc * xc, axis=-1, keepdims=True)
    return xc * jax.lax.rsqrt(var + eps)


def _silu(x):
    return x * jax.nn.sigmoid(x)


# ----------------------------- parameters --------------------------------

def init_params(key, depth, dim, heads, dim_head, ff_mult, mel_dim):
    inner = heads * dim_head
    dff = dim * ff_mult
    shapes = {
        "w_ada": (depth, dim, 6 * dim), "b_ada": (depth, 1, 6 * dim),
        "w_q": (depth, dim, inner), "b_q": (depth, 1, inner),
        "w_k": (depth, dim, inner), "b_k": (depth, 1, inner),
        "w_v": (depth, dim, inner), "b_v": (depth, 1, inner),
        "w_o": (depth, inner, dim), "b_o": (depth, 1, dim),
        "w_f1": (depth, dim, dff), "b_f1": (depth, 1, dff),
        "w_f2": (depth, dff, dim), "b_f2": (depth, 1, dim),
        "w_no": (dim, 2 * dim), "b_no": (1, 2 * dim),
        "w_pr": (dim, mel_dim), "b_pr": (1, mel_dim),
    }
    names = sorted(shapes)
    keys = jax.random.split(key, len(names))
    params = {}
    for k_, name in zip(keys, names):
        scale = 0.05 if name.startswith("w") else 0.02
        params[name] = jax.random.normal(k_, shapes[name], jnp.float32) * scale
    return params


# ----------------------------- Pallas kernel -----------------------------

def dit_blocks_forward(params, x, t, mask, rope_freqs, heads):
    """x: (B,N,D) f32, t: (B,D) f32, mask: (B,N) float (1=valid),
    rope_freqs: (N, rot_dim) f32 interleaved-repeated rotary angles."""
    B, N, dim = x.shape
    rot_dim = rope_freqs.shape[-1]
    inner = params["w_q"].shape[-1]
    dff = params["w_f1"].shape[-1]
    mel_dim = params["w_pr"].shape[-1]
    depth = params["w_q"].shape[0]
    head_dim = inner // heads
    assert rot_dim <= inner

    f32, bf16 = jnp.float32, jnp.bfloat16

    # ---- hoisted modulation (AdaLayerNormZero + norm_out): tiny matmuls on t ----
    silu_t = _silu(t)                                                   # (B, dim)
    emb_all = (jnp.einsum("bd,ldk->lbk", silu_t, params["w_ada"])
               + params["b_ada"]).reshape(depth, B, 6, dim).astype(f32)  # (L,B,6,dim)
    emb2 = (silu_t @ params["w_no"] + params["b_no"]).reshape(B, 2, dim).astype(f32)

    # ---- RoPE tables: per-head cos/sin (pass-through channels: cos=1, sin=0) ----
    cos_flat = jnp.concatenate(
        [jnp.cos(rope_freqs), jnp.ones((N, inner - rot_dim), f32)], axis=-1)
    sin_flat = jnp.concatenate(
        [jnp.sin(rope_freqs), jnp.zeros((N, inner - rot_dim), f32)], axis=-1)
    cos_t = cos_flat.reshape(N, heads, head_dim).transpose(1, 0, 2)     # (H,N,hd)
    sin_t = sin_flat.reshape(N, heads, head_dim).transpose(1, 0, 2)
    n_rot_heads = -(-rot_dim // head_dim)        # heads touched by rotary (static)

    # pair-swap-with-sign matrix for rotate_half within a head (exact in bf16)
    rmat_np = np.zeros((head_dim, head_dim), np.float32)
    for i in range(head_dim // 2):
        rmat_np[2 * i + 1, 2 * i] = -1.0   # out[2i]   = -u[2i+1]
        rmat_np[2 * i, 2 * i + 1] = 1.0    # out[2i+1] =  u[2i]
    rmat = jnp.asarray(rmat_np).astype(bf16)

    # masks in two layouts to avoid in-kernel transposes
    mask_k = mask.reshape(B, 1, N).astype(f32)   # key mask
    mask_q = mask.reshape(B, N, 1).astype(f32)   # query-row output mask

    # bf16 weights for the MXU (biases stay f32)
    wq, wk, wv = (params[n].astype(bf16) for n in ("w_q", "w_k", "w_v"))
    wo, wf1, wf2 = (params[n].astype(bf16) for n in ("w_o", "w_f1", "w_f2"))
    wpr = params["w_pr"].astype(bf16)

    def kernel(x_ref, mask_k_ref, mask_q_ref, cos_ref, sin_ref, rmat_ref,
               emb_ref, emb2_ref,
               w_q_ref, b_q_ref, w_k_ref, b_k_ref, w_v_ref, b_v_ref,
               w_o_ref, b_o_ref, w_f1_ref, b_f1_ref, w_f2_ref, b_f2_ref,
               w_pr_ref, b_pr_ref, out_ref, x_state):
        d = pl.program_id(1)
        nlayers = pl.num_programs(1)

        @pl.when(d == 0)
        def _():
            x_state[...] = x_ref[...].reshape(N, dim)

        xcur = x_state[...]                               # (N, dim) f32
        maskk = mask_k_ref[...].reshape(1, N)
        maskq = mask_q_ref[...].reshape(N, 1)
        e = emb_ref[...].reshape(6, dim)                  # per-(b, layer) modulation
        shift_msa, scale_msa, gate_msa = e[0:1], e[1:2], e[2:3]
        shift_mlp, scale_mlp, gate_mlp = e[3:4], e[4:5], e[5:6]

        # ---- AdaLayerNormZero (modulation precomputed outside the kernel) ----
        xn = _ln(xcur) * (1.0 + scale_msa) + shift_msa
        xn_b = xn.astype(jnp.bfloat16)

        q = jnp.dot(xn_b, w_q_ref[0], preferred_element_type=jnp.float32) + b_q_ref[0]
        k = jnp.dot(xn_b, w_k_ref[0], preferred_element_type=jnp.float32) + b_k_ref[0]
        v = jnp.dot(xn_b, w_v_ref[0], preferred_element_type=jnp.float32) + b_v_ref[0]
        vb = v.astype(jnp.bfloat16)

        rm = rmat_ref[...]                                # (hd, hd) bf16
        w_o_full = w_o_ref[0]                             # (inner, dim) bf16
        scale = 1.0 / float(head_dim) ** 0.5

        attn = jnp.zeros((N, dim), jnp.float32)
        for h in range(heads):                            # static unroll
            lo = h * head_dim
            qh = q[:, lo:lo + head_dim]
            kh = k[:, lo:lo + head_dim]
            if h < n_rot_heads:
                # partial rotary: tiny (hd,hd) pair-swap matmul + cos/sin mul
                ch, sh = cos_ref[h], sin_ref[h]
                qh = qh * ch + jnp.dot(qh.astype(jnp.bfloat16), rm,
                                       preferred_element_type=jnp.float32) * sh
                kh = kh * ch + jnp.dot(kh.astype(jnp.bfloat16), rm,
                                       preferred_element_type=jnp.float32) * sh
            s = jax.lax.dot_general(
                qh.astype(jnp.bfloat16), kh.astype(jnp.bfloat16),
                (((1,), (1,)), ((), ())),
                preferred_element_type=jnp.float32) * scale          # (N, N)
            s = jnp.where(maskk > 0.5, s, -1e30)          # finite mask (no NaN)
            s = s - jnp.max(s, axis=-1, keepdims=True)
            p = jnp.exp(s)
            p = p / jnp.sum(p, axis=-1, keepdims=True)
            oh = jnp.dot(p.astype(jnp.bfloat16), vb[:, lo:lo + head_dim],
                         preferred_element_type=jnp.float32)         # (N, hd)
            # fold through this head's slice of W_o (no concat of heads)
            attn = attn + jnp.dot(oh.astype(jnp.bfloat16),
                                  w_o_full[lo:lo + head_dim, :],
                                  preferred_element_type=jnp.float32)
        attn = (attn + b_o_ref[0]) * maskq                # masked_fill(~mask, 0)

        xcur = xcur + gate_msa * attn

        # ---- FeedForward (GELU-tanh) ----
        xn2 = _ln(xcur) * (1.0 + scale_mlp) + shift_mlp
        h1 = jnp.dot(xn2.astype(jnp.bfloat16), w_f1_ref[0],
                     preferred_element_type=jnp.float32) + b_f1_ref[0]
        h1 = jax.nn.gelu(h1, approximate=True)
        ff = jnp.dot(h1.astype(jnp.bfloat16), w_f2_ref[0],
                     preferred_element_type=jnp.float32) + b_f2_ref[0]
        xcur = xcur + gate_mlp * ff

        x_state[...] = xcur

        # ---- final AdaLayerNorm + proj_out on the last layer ----
        @pl.when(d == nlayers - 1)
        def _():
            e2 = emb2_ref[...].reshape(2, dim)
            scale_f, shift_f = e2[0:1], e2[1:2]
            xf = _ln(xcur) * (1.0 + scale_f) + shift_f
            out = jnp.dot(xf.astype(jnp.bfloat16), w_pr_ref[...],
                          preferred_element_type=jnp.float32) + b_pr_ref[...]
            out_ref[...] = out.reshape(1, N, mel_dim)

    idx_b3 = lambda b, d: (b, 0, 0)       # per-batch, full last two dims
    idx_w3 = lambda b, d: (d, 0, 0)       # per-layer weights / biases
    idx_emb = lambda b, d: (d, b, 0, 0)   # per (layer, batch) modulation
    idx_c2 = lambda b, d: (0, 0)          # constants
    idx_c3 = lambda b, d: (0, 0, 0)

    in_specs = [
        pl.BlockSpec((1, N, dim), idx_b3),                 # x
        pl.BlockSpec((1, 1, N), idx_b3),                   # mask (keys)
        pl.BlockSpec((1, N, 1), idx_b3),                   # mask (query rows)
        pl.BlockSpec((heads, N, head_dim), idx_c3),        # cos table
        pl.BlockSpec((heads, N, head_dim), idx_c3),        # sin table
        pl.BlockSpec((head_dim, head_dim), idx_c2),        # rotate-half matrix
        pl.BlockSpec((1, 1, 6, dim), idx_emb),             # AdaLN modulation
        pl.BlockSpec((1, 2, dim), idx_b3),                 # norm_out modulation
        pl.BlockSpec((1, dim, inner), idx_w3), pl.BlockSpec((1, 1, inner), idx_w3),  # q
        pl.BlockSpec((1, dim, inner), idx_w3), pl.BlockSpec((1, 1, inner), idx_w3),  # k
        pl.BlockSpec((1, dim, inner), idx_w3), pl.BlockSpec((1, 1, inner), idx_w3),  # v
        pl.BlockSpec((1, inner, dim), idx_w3), pl.BlockSpec((1, 1, dim), idx_w3),    # o
        pl.BlockSpec((1, dim, dff), idx_w3), pl.BlockSpec((1, 1, dff), idx_w3),      # ff1
        pl.BlockSpec((1, dff, dim), idx_w3), pl.BlockSpec((1, 1, dim), idx_w3),      # ff2
        pl.BlockSpec((dim, mel_dim), idx_c2), pl.BlockSpec((1, mel_dim), idx_c2),    # proj_out
    ]

    grid_spec = pltpu.PrefetchScalarGridSpec(
        num_scalar_prefetch=0,
        grid=(B, depth),                    # depth innermost; batch is parallel
        in_specs=in_specs,
        out_specs=pl.BlockSpec((1, N, mel_dim), idx_b3),
        scratch_shapes=[pltpu.VMEM((N, dim), jnp.float32)],
    )

    fn = pl.pallas_call(
        kernel,
        out_shape=jax.ShapeDtypeStruct((B, N, mel_dim), jnp.float32),
        grid_spec=grid_spec,
        compiler_params=pltpu.CompilerParams(
            dimension_semantics=("parallel", "arbitrary"),
            vmem_limit_bytes=48 * 1024 * 1024,
        ),
    )

    return fn(x.astype(f32), mask_k, mask_q, cos_t, sin_t, rmat,
              emb_all, emb2,
              wq, params["b_q"], wk, params["b_k"], wv, params["b_v"],
              wo, params["b_o"], wf1, params["b_f1"], wf2, params["b_f2"],
              wpr, params["b_pr"])


# ----------------------------- pure-JAX reference -----------------------------

def ref_forward(params, x, t, mask, rope_freqs, heads):
    B, N, dim = x.shape
    rot_dim = rope_freqs.shape[-1]
    inner = params["w_q"].shape[-1]
    depth = params["w_q"].shape[0]
    head_dim = inner // heads
    maskb = mask > 0.5
    cos = jnp.cos(rope_freqs)
    sin = jnp.sin(rope_freqs)

    def rope_apply(u):
        ur, up = u[..., :rot_dim], u[..., rot_dim:]
        u1, u2 = ur[..., 0::2], ur[..., 1::2]
        rot = jnp.stack([-u2, u1], axis=-1).reshape(ur.shape)
        return jnp.concatenate([ur * cos + rot * sin, up], axis=-1)

    for l in range(depth):
        emb = _silu(t) @ params["w_ada"][l] + params["b_ada"][l][0]
        (shift_msa, scale_msa, gate_msa,
         shift_mlp, scale_mlp, gate_mlp) = jnp.split(emb, 6, axis=-1)
        xn = _ln(x) * (1 + scale_msa[:, None, :]) + shift_msa[:, None, :]
        q = xn @ params["w_q"][l] + params["b_q"][l][0]
        k = xn @ params["w_k"][l] + params["b_k"][l][0]
        v = xn @ params["w_v"][l] + params["b_v"][l][0]
        q, k = rope_apply(q), rope_apply(k)
        qh = q.reshape(B, N, heads, head_dim).transpose(0, 2, 1, 3)
        kh = k.reshape(B, N, heads, head_dim).transpose(0, 2, 1, 3)
        vh = v.reshape(B, N, heads, head_dim).transpose(0, 2, 1, 3)
        s = jnp.einsum("bhid,bhjd->bhij", qh, kh) / jnp.sqrt(float(head_dim))
        s = jnp.where(maskb[:, None, None, :], s, -jnp.inf)
        p = jax.nn.softmax(s, axis=-1)
        o = jnp.einsum("bhij,bhjd->bhid", p, vh).transpose(0, 2, 1, 3).reshape(B, N, inner)
        o = o @ params["w_o"][l] + params["b_o"][l][0]
        o = jnp.where(maskb[:, :, None], o, 0.0)
        x = x + gate_msa[:, None, :] * o
        xn2 = _ln(x) * (1 + scale_mlp[:, None, :]) + shift_mlp[:, None, :]
        h1 = jax.nn.gelu(xn2 @ params["w_f1"][l] + params["b_f1"][l][0], approximate=True)
        ff = h1 @ params["w_f2"][l] + params["b_f2"][l][0]
        x = x + gate_mlp[:, None, :] * ff

    emb2 = _silu(t) @ params["w_no"] + params["b_no"][0]
    scale_f, shift_f = jnp.split(emb2, 2, axis=-1)
    xf = _ln(x) * (1 + scale_f[:, None, :]) + shift_f[:, None, :]
    return xf @ params["w_pr"] + params["b_pr"][0]


# ----------------------------- main -----------------------------

if __name__ == "__main__":
    B, N = 2, 8
    dim, heads, dim_head, ff_mult, mel_dim, depth = 128, 2, 64, 2, 16, 2

    key = jax.random.PRNGKey(0)
    k_x, k_t, k_p = jax.random.split(key, 3)
    x = jax.random.normal(k_x, (B, N, dim), jnp.float32)
    t = jax.random.normal(k_t, (B, dim), jnp.float32)
    # bool mask passed as float (1.0 = valid); batch 1 has two padded positions
    mask = jnp.ones((B, N), jnp.float32).at[1, 6:].set(0.0)

    # rotary angles, interleaved-repeated (rotary_embedding_torch convention);
    # rot_dim == dim_head < inner, so only the first head gets rotated
    inv_freq = 1.0 / (10000.0 ** (jnp.arange(0, dim_head, 2, dtype=jnp.float32) / dim_head))
    pos = jnp.arange(N, dtype=jnp.float32)
    rope = jnp.repeat(pos[:, None] * inv_freq[None, :], 2, axis=-1)   # (N, dim_head)

    params = init_params(k_p, depth, dim, heads, dim_head, ff_mult, mel_dim)
    # round-trip the MXU weights through bf16 so the kernel (bf16) and the f32
    # reference see numerically identical weight values
    for name in ("w_q", "w_k", "w_v", "w_o", "w_f1", "w_f2", "w_pr"):
        params[name] = params[name].astype(jnp.bfloat16).astype(jnp.float32)

    out = dit_blocks_forward(params, x, t, mask, rope, heads)
    out = jax.block_until_ready(out)
    assert out.shape == (B, N, mel_dim)

    ref = jax.block_until_ready(ref_forward(params, x, t, mask, rope, heads))
    np.testing.assert_allclose(np.asarray(out), np.asarray(ref), atol=3e-2, rtol=3e-2)

    print("KERNEL_OK")
</pallas_src>

<mosaic_0001>
module attributes {stable_mosaic.version = 11 : i64} {
  func.func @kernel(%arg0: i32, %arg1: i32, %arg2: memref<1x8x128xf32, #tpu.memory_space<vmem>>, %arg3: memref<1x1x8xf32, #tpu.memory_space<vmem>>, %arg4: memref<1x8x1xf32, #tpu.memory_space<vmem>>, %arg5: memref<2x8x64xf32, #tpu.memory_space<vmem>>, %arg6: memref<2x8x64xf32, #tpu.memory_space<vmem>>, %arg7: memref<64x64xbf16, #tpu.memory_space<vmem>>, %arg8: memref<1x1x6x128xf32, #tpu.memory_space<vmem>>, %arg9: memref<1x2x128xf32, #tpu.memory_space<vmem>>, %arg10: memref<1x128x128xbf16, #tpu.memory_space<vmem>>, %arg11: memref<1x1x128xf32, #tpu.memory_space<vmem>>, %arg12: memref<1x128x128xbf16, #tpu.memory_space<vmem>>, %arg13: memref<1x1x128xf32, #tpu.memory_space<vmem>>, %arg14: memref<1x128x128xbf16, #tpu.memory_space<vmem>>, %arg15: memref<1x1x128xf32, #tpu.memory_space<vmem>>, %arg16: memref<1x128x128xbf16, #tpu.memory_space<vmem>>, %arg17: memref<1x1x128xf32, #tpu.memory_space<vmem>>, %arg18: memref<1x128x256xbf16, #tpu.memory_space<vmem>>, %arg19: memref<1x1x256xf32, #tpu.memory_space<vmem>>, %arg20: memref<1x256x128xbf16, #tpu.memory_space<vmem>>, %arg21: memref<1x1x128xf32, #tpu.memory_space<vmem>>, %arg22: memref<128x16xbf16, #tpu.memory_space<vmem>>, %arg23: memref<1x16xf32, #tpu.memory_space<vmem>>, %arg24: memref<1x8x16xf32, #tpu.memory_space<vmem>>, %arg25: memref<8x128xf32, #tpu.memory_space<vmem>>) attributes {dimension_semantics = [#tpu.dimension_semantics<parallel>, #tpu.dimension_semantics<arbitrary>], iteration_bounds = array<i64: 2, 2>, scalar_prefetch = 0 : i64, scratch_operands = 1 : i64, tpu.core_type = #tpu.core_type<tc>, window_params = [{transform_indices = @transform_0, window_bounds = array<i64: 1, 8, 128>}, {transform_indices = @transform_1, window_bounds = array<i64: 1, 1, 8>}, {transform_indices = @transform_2, window_bounds = array<i64: 1, 8, 1>}, {pipeline_mode = #tpu.pipeline_mode<synchronous>, transform_indices = @transform_3, window_bounds = array<i64: 2, 8, 64>}, {pipeline_mode = #tpu.pipeline_mode<synchronous>, transform_indices = @transform_4, window_bounds = array<i64: 2, 8, 64>}, {pipeline_mode = #tpu.pipeline_mode<synchronous>, transform_indices = @transform_5, window_bounds = array<i64: 64, 64>}, {transform_indices = @transform_6, window_bounds = array<i64: 1, 1, 6, 128>}, {transform_indices = @transform_7, window_bounds = array<i64: 1, 2, 128>}, {transform_indices = @transform_8, window_bounds = array<i64: 1, 128, 128>}, {transform_indices = @transform_9, window_bounds = array<i64: 1, 1, 128>}, {transform_indices = @transform_10, window_bounds = array<i64: 1, 128, 128>}, {transform_indices = @transform_11, window_bounds = array<i64: 1, 1, 128>}, {transform_indices = @transform_12, window_bounds = array<i64: 1, 128, 128>}, {transform_indices = @transform_13, window_bounds = array<i64: 1, 1, 128>}, {transform_indices = @transform_14, window_bounds = array<i64: 1, 128, 128>}, {transform_indices = @transform_15, window_bounds = array<i64: 1, 1, 128>}, {transform_indices = @transform_16, window_bounds = array<i64: 1, 128, 256>}, {transform_indices = @transform_17, window_bounds = array<i64: 1, 1, 256>}, {transform_indices = @transform_18, window_bounds = array<i64: 1, 256, 128>}, {transform_indices = @transform_19, window_bounds = array<i64: 1, 1, 128>}, {pipeline_mode = #tpu.pipeline_mode<synchronous>, transform_indices = @transform_20, window_bounds = array<i64: 128, 16>}, {pipeline_mode = #tpu.pipeline_mode<synchronous>, transform_indices = @transform_21, window_bounds = array<i64: 1, 16>}, {transform_indices = @transform_22, window_bounds = array<i64: 1, 8, 16>}]} {
    %c0_i32 = arith.constant 0 : i32
    %0 = arith.cmpi eq, %arg1, %c0_i32 : i32
    %1 = arith.extui %0 : i1 to i32
    %c0_i32_0 = arith.constant 0 : i32
    %2 = arith.cmpi ne, %1, %c0_i32_0 : i32
    scf.if %2 {
      %c0_98 = arith.constant 0 : index
      %c0_99 = arith.constant 0 : index
      %c0_100 = arith.constant 0 : index
      %204 = vector.load %arg2[%c0_98, %c0_99, %c0_100] : memref<1x8x128xf32, #tpu.memory_space<vmem>>, vector<1x8x128xf32>
      %205 = vector.shape_cast %204 : vector<1x8x128xf32> to vector<8x128xf32>
      %c0_101 = arith.constant 0 : index
      %c0_102 = arith.constant 0 : index
      %206 = vector.load %arg25[%c0_101, %c0_102] : memref<8x128xf32, #tpu.memory_space<vmem>>, vector<8x128xf32>
      tpu.vector_store %arg25[%c0_101, %c0_102], %205 {strides = array<i32>} : memref<8x128xf32, #tpu.memory_space<vmem>>, vector<8x128xf32>,
    } else {
    }
    %c0 = arith.constant 0 : index
    %c0_1 = arith.constant 0 : index
    %3 = vector.load %arg25[%c0, %c0_1] : memref<8x128xf32, #tpu.memory_space<vmem>>, vector<8x128xf32>
    %c0_2 = arith.constant 0 : index
    %c0_3 = arith.constant 0 : index
    %c0_4 = arith.constant 0 : index
    %4 = vector.load %arg3[%c0_2, %c0_3, %c0_4] : memref<1x1x8xf32, #tpu.memory_space<vmem>>, vector<1x1x8xf32>
    %5 = vector.shape_cast %4 : vector<1x1x8xf32> to vector<1x8xf32>
    %c0_5 = arith.constant 0 : index
    %c0_6 = arith.constant 0 : index
    %c0_7 = arith.constant 0 : index
    %6 = vector.load %arg4[%c0_5, %c0_6, %c0_7] : memref<1x8x1xf32, #tpu.memory_space<vmem>>, vector<1x8x1xf32>
    %7 = vector.shape_cast %6 : vector<1x8x1xf32> to vector<8x1xf32>
    %c0_8 = arith.constant 0 : index
    %c0_9 = arith.constant 0 : index
    %c0_10 = arith.constant 0 : index
    %c0_11 = arith.constant 0 : index
    %8 = vector.load %arg8[%c0_8, %c0_9, %c0_10, %c0_11] : memref<1x1x6x128xf32, #tpu.memory_space<vmem>>, vector<1x1x6x128xf32>
    %9 = vector.shape_cast %8 : vector<1x1x6x128xf32> to vector<6x128xf32>
    %10 = vector.extract_strided_slice %9 {offsets = [0, 0], sizes = [1, 128], strides = [1, 1]} : vector<6x128xf32> to vector<1x128xf32>
    %11 = vector.extract_strided_slice %9 {offsets = [1, 0], sizes = [1, 128], strides = [1, 1]} : vector<6x128xf32> to vector<1x128xf32>
    %12 = vector.extract_strided_slice %9 {offsets = [2, 0], sizes = [1, 128], strides = [1, 1]} : vector<6x128xf32> to vector<1x128xf32>
    %13 = vector.extract_strided_slice %9 {offsets = [3, 0], sizes = [1, 128], strides = [1, 1]} : vector<6x128xf32> to vector<1x128xf32>
    %14 = vector.extract_strided_slice %9 {offsets = [4, 0], sizes = [1, 128], strides = [1, 1]} : vector<6x128xf32> to vector<1x128xf32>
    %15 = vector.extract_strided_slice %9 {offsets = [5, 0], sizes = [1, 128], strides = [1, 1]} : vector<6x128xf32> to vector<1x128xf32>
    %cst = arith.constant dense<0.000000e+00> : vector<8xf32>
    %16 = vector.multi_reduction <add>, %3, %cst [1] : vector<8x128xf32> to vector<8xf32>
    %17 = vector.shape_cast %16 : vector<8xf32> to vector<8x1xf32>
    %cst_12 = arith.constant 1.280000e+02 : f32
    %18 = vector.broadcast %cst_12 : f32 to vector<8x1xf32>
    %19 = arith.divf %17, %18 : vector<8x1xf32>
    %20 = vector.broadcast %19 : vector<8x1xf32> to vector<8x128xf32>
    %21 = arith.subf %3, %20 : vector<8x128xf32>
    %22 = arith.mulf %21, %21 : vector<8x128xf32>
    %cst_13 = arith.constant dense<0.000000e+00> : vector<8xf32>
    %23 = vector.multi_reduction <add>, %22, %cst_13 [1] : vector<8x128xf32> to vector<8xf32>
    %24 = vector.shape_cast %23 : vector<8xf32> to vector<8x1xf32>
    %cst_14 = arith.constant 1.280000e+02 : f32
    %25 = vector.broadcast %cst_14 : f32 to vector<8x1xf32>
    %26 = arith.divf %24, %25 : vector<8x1xf32>
    %cst_15 = arith.constant 9.99999997E-7 : f32
    %27 = vector.broadcast %cst_15 : f32 to vector<8x1xf32>
    %28 = arith.addf %26, %27 : vector<8x1xf32>
    %29 = math.rsqrt %28 : vector<8x1xf32>
    %30 = vector.broadcast %29 : vector<8x1xf32> to vector<8x128xf32>
    %31 = arith.mulf %21, %30 : vector<8x128xf32>
    %cst_16 = arith.constant 1.000000e+00 : f32
    %32 = vector.broadcast %cst_16 : f32 to vector<1x128xf32>
    %33 = arith.addf %32, %11 : vector<1x128xf32>
    %34 = vector.broadcast %33 : vector<1x128xf32> to vector<8x128xf32>
    %35 = arith.mulf %31, %34 : vector<8x128xf32>
    %36 = vector.broadcast %10 : vector<1x128xf32> to vector<8x128xf32>
    %37 = arith.addf %35, %36 : vector<8x128xf32>
    %38 = arith.truncf %37 : vector<8x128xf32> to vector<8x128xbf16>
    %c0_17 = arith.constant 0 : index
    %c0_18 = arith.constant 0 : index
    %c0_19 = arith.constant 0 : index
    %39 = vector.load %arg10[%c0_17, %c0_18, %c0_19] : memref<1x128x128xbf16, #tpu.memory_space<vmem>>, vector<1x128x128xbf16>
    %40 = vector.shape_cast %39 : vector<1x128x128xbf16> to vector<128x128xbf16>
    %cst_20 = arith.constant dense<0.000000e+00> : vector<8x128xf32>
    %41 = tpu.matmul %38, %40, %cst_20 {dimension_numbers = #tpu.dot_dimension_numbers<[1], [0], [0], [1], [0, 0, 1, 1], [], []>} : vector<8x128xbf16>, vector<128x128xbf16>, vector<8x128xf32> -> vector<8x128xf32>
    %c0_21 = arith.constant 0 : index
    %c0_22 = arith.constant 0 : index
    %c0_23 = arith.constant 0 : index
    %42 = vector.load %arg11[%c0_21, %c0_22, %c0_23] : memref<1x1x128xf32, #tpu.memory_space<vmem>>, vector<1x1x128xf32>
    %43 = vector.shape_cast %42 : vector<1x1x128xf32> to vector<1x128xf32>
    %44 = vector.broadcast %43 : vector<1x128xf32> to vector<8x128xf32>
    %45 = arith.addf %41, %44 : vector<8x128xf32>
    %c0_24 = arith.constant 0 : index
    %c0_25 = arith.constant 0 : index
    %c0_26 = arith.constant 0 : index
    %46 = vector.load %arg12[%c0_24, %c0_25, %c0_26] : memref<1x128x128xbf16, #tpu.memory_space<vmem>>, vector<1x128x128xbf16>
    %47 = vector.shape_cast %46 : vector<1x128x128xbf16> to vector<128x128xbf16>
    %cst_27 = arith.constant dense<0.000000e+00> : vector<8x128xf32>
    %48 = tpu.matmul %38, %47, %cst_27 {dimension_numbers = #tpu.dot_dimension_numbers<[1], [0], [0], [1], [0, 0, 1, 1], [], []>} : vector<8x128xbf16>, vector<128x128xbf16>, vector<8x128xf32> -> vector<8x128xf32>
    %c0_28 = arith.constant 0 : index
    %c0_29 = arith.constant 0 : index
    %c0_30 = arith.constant 0 : index
    %49 = vector.load %arg13[%c0_28, %c0_29, %c0_30] : memref<1x1x128xf32, #tpu.memory_space<vmem>>, vector<1x1x128xf32>
    %50 = vector.shape_cast %49 : vector<1x1x128xf32> to vector<1x128xf32>
    %51 = vector.broadcast %50 : vector<1x128xf32> to vector<8x128xf32>
    %52 = arith.addf %48, %51 : vector<8x128xf32>
    %c0_31 = arith.constant 0 : index
    %c0_32 = arith.constant 0 : index
    %c0_33 = arith.constant 0 : index
    %53 = vector.load %arg14[%c0_31, %c0_32, %c0_33] : memref<1x128x128xbf16, #tpu.memory_space<vmem>>, vector<1x128x128xbf16>
    %54 = vector.shape_cast %53 : vector<1x128x128xbf16> to vector<128x128xbf16>
    %cst_34 = arith.constant dense<0.000000e+00> : vector<8x128xf32>
    %55 = tpu.matmul %38, %54, %cst_34 {dimension_numbers = #tpu.dot_dimension_numbers<[1], [0], [0], [1], [0, 0, 1, 1], [], []>} : vector<8x128xbf16>, vector<128x128xbf16>, vector<8x128xf32> -> vector<8x128xf32>
    %c0_35 = arith.constant 0 : index
    %c0_36 = arith.constant 0 : index
    %c0_37 = arith.constant 0 : index
    %56 = vector.load %arg15[%c0_35, %c0_36, %c0_37] : memref<1x1x128xf32, #tpu.memory_space<vmem>>, vector<1x1x128xf32>
    %57 = vector.shape_cast %56 : vector<1x1x128xf32> to vector<1x128xf32>
    %58 = vector.broadcast %57 : vector<1x128xf32> to vector<8x128xf32>
    %59 = arith.addf %55, %58 : vector<8x128xf32>
    %60 = arith.truncf %59 : vector<8x128xf32> to vector<8x128xbf16>
    %c0_38 = arith.constant 0 : index
    %c0_39 = arith.constant 0 : index
    %61 = vector.load %arg7[%c0_38, %c0_39] : memref<64x64xbf16, #tpu.memory_space<vmem>>, vector<64x64xbf16>
    %c0_40 = arith.constant 0 : index
    %c0_41 = arith.constant 0 : index
    %c0_42 = arith.constant 0 : index
    %62 = vector.load %arg16[%c0_40, %c0_41, %c0_42] : memref<1x128x128xbf16, #tpu.memory_space<vmem>>, vector<1x128x128xbf16>
    %63 = vector.shape_cast %62 : vector<1x128x128xbf16> to vector<128x128xbf16>
    %cst_43 = arith.constant 0.000000e+00 : f32
    %64 = vector.broadcast %cst_43 : f32 to vector<8x128xf32>
    %65 = vector.extract_strided_slice %45 {offsets = [0, 0], sizes = [8, 64], strides = [1, 1]} : vector<8x128xf32> to vector<8x64xf32>
    %66 = vector.extract_strided_slice %52 {offsets = [0, 0], sizes = [8, 64], strides = [1, 1]} : vector<8x128xf32> to vector<8x64xf32>
    %c0_44 = arith.constant 0 : index
    %c0_45 = arith.constant 0 : index
    %c0_46 = arith.constant 0 : index
    %67 = vector.load %arg5[%c0_44, %c0_45, %c0_46] : memref<2x8x64xf32, #tpu.memory_space<vmem>>, vector<1x8x64xf32>
    %68 = vector.shape_cast %67 : vector<1x8x64xf32> to vector<8x64xf32>
    %c0_47 = arith.constant 0 : index
    %c0_48 = arith.constant 0 : index
    %c0_49 = arith.constant 0 : index
    %69 = vector.load %arg6[%c0_47, %c0_48, %c0_49] : memref<2x8x64xf32, #tpu.memory_space<vmem>>, vector<1x8x64xf32>
    %70 = vector.shape_cast %69 : vector<1x8x64xf32> to vector<8x64xf32>
    %71 = arith.mulf %65, %68 : vector<8x64xf32>
    %72 = arith.truncf %65 : vector<8x64xf32> to vector<8x64xbf16>
    %cst_50 = arith.constant dense<0.000000e+00> : vector<8x64xf32>
    %73 = tpu.matmul %72, %61, %cst_50 {dimension_numbers = #tpu.dot_dimension_numbers<[1], [0], [0], [1], [0, 0, 1, 1], [], []>} : vector<8x64xbf16>, vector<64x64xbf16>, vector<8x64xf32> -> vector<8x64xf32>
    %74 = arith.mulf %73, %70 : vector<8x64xf32>
    %75 = arith.addf %71, %74 : vector<8x64xf32>
    %76 = arith.mulf %66, %68 : vector<8x64xf32>
    %77 = arith.truncf %66 : vector<8x64xf32> to vector<8x64xbf16>
    %cst_51 = arith.constant dense<0.000000e+00> : vector<8x64xf32>
    %78 = tpu.matmul %77, %61, %cst_51 {dimension_numbers = #tpu.dot_dimension_numbers<[1], [0], [0], [1], [0, 0, 1, 1], [], []>} : vector<8x64xbf16>, vector<64x64xbf16>, vector<8x64xf32> -> vector<8x64xf32>
    %79 = arith.mulf %78, %70 : vector<8x64xf32>
    %80 = arith.addf %76, %79 : vector<8x64xf32>
    %81 = arith.truncf %75 : vector<8x64xf32> to vector<8x64xbf16>
    %82 = arith.truncf %80 : vector<8x64xf32> to vector<8x64xbf16>
    %cst_52 = arith.constant dense<0.000000e+00> : vector<8x8xf32>
    %83 = tpu.matmul %81, %82, %cst_52 {dimension_numbers = #tpu.dot_dimension_numbers<[1], [1], [0], [0], [0, 0, 1, 0], [], []>} : vector<8x64xbf16>, vector<8x64xbf16>, vector<8x8xf32> -> vector<8x8xf32>
    %cst_53 = arith.constant 1.250000e-01 : f32
    %84 = vector.broadcast %cst_53 : f32 to vector<8x8xf32>
    %85 = arith.mulf %83, %84 : vector<8x8xf32>
    %cst_54 = arith.constant 5.000000e-01 : f32
    %86 = vector.broadcast %cst_54 : f32 to vector<1x8xf32>
    %87 = arith.cmpf ogt, %5, %86 : vector<1x8xf32>
    %cst_55 = arith.constant -1.000000e+30 : f32
    %88 = vector.shape_cast %87 : vector<1x8xi1> to vector<1x8xi1>
    %89 = vector.broadcast %88 : vector<1x8xi1> to vector<8x8xi1>
    %90 = vector.broadcast %cst_55 : f32 to vector<8x8xf32>
    %91 = arith.select %89, %85, %90 : vector<8x8xi1>, vector<8x8xf32>
    %cst_56 = arith.constant dense<0xFF800000> : vector<8xf32>
    %92 = vector.multi_reduction <maximumf>, %91, %cst_56 [1] : vector<8x8xf32> to vector<8xf32>
    %93 = vector.shape_cast %92 : vector<8xf32> to vector<8x1xf32>
    %94 = vector.broadcast %93 : vector<8x1xf32> to vector<8x8xf32>
    %95 = arith.subf %91, %94 : vector<8x8xf32>
    %96 = math.exp %95 : vector<8x8xf32>
    %cst_57 = arith.constant dense<0.000000e+00> : vector<8xf32>
    %97 = vector.multi_reduction <add>, %96, %cst_57 [1] : vector<8x8xf32> to vector<8xf32>
    %98 = vector.shape_cast %97 : vector<8xf32> to vector<8x1xf32>
    %99 = vector.broadcast %98 : vector<8x1xf32> to vector<8x8xf32>
    %100 = arith.divf %96, %99 : vector<8x8xf32>
    %101 = arith.truncf %100 : vector<8x8xf32> to vector<8x8xbf16>
    %102 = vector.extract_strided_slice %60 {offsets = [0, 0], sizes = [8, 64], strides = [1, 1]} : vector<8x128xbf16> to vector<8x64xbf16>
    %cst_58 = arith.constant dense<0.000000e+00> : vector<8x64xf32>
    %103 = tpu.matmul %101, %102, %cst_58 {dimension_numbers = #tpu.dot_dimension_numbers<[1], [0], [0], [1], [0, 0, 1, 1], [], []>} : vector<8x8xbf16>, vector<8x64xbf16>, vector<8x64xf32> -> vector<8x64xf32>
    %104 = arith.truncf %103 : vector<8x64xf32> to vector<8x64xbf16>
    %105 = vector.extract_strided_slice %63 {offsets = [0, 0], sizes = [64, 128], strides = [1, 1]} : vector<128x128xbf16> to vector<64x128xbf16>
    %cst_59 = arith.constant dense<0.000000e+00> : vector<8x128xf32>
    %106 = tpu.matmul %104, %105, %cst_59 {dimension_numbers = #tpu.dot_dimension_numbers<[1], [0], [0], [1], [0, 0, 1, 1], [], []>} : vector<8x64xbf16>, vector<64x128xbf16>, vector<8x128xf32> -> vector<8x128xf32>
    %107 = arith.addf %64, %106 : vector<8x128xf32>
    %108 = vector.extract_strided_slice %45 {offsets = [0, 64], sizes = [8, 64], strides = [1, 1]} : vector<8x128xf32> to vector<8x64xf32>
    %109 = vector.extract_strided_slice %52 {offsets = [0, 64], sizes = [8, 64], strides = [1, 1]} : vector<8x128xf32> to vector<8x64xf32>
    %110 = arith.truncf %108 : vector<8x64xf32> to vector<8x64xbf16>
    %111 = arith.truncf %109 : vector<8x64xf32> to vector<8x64xbf16>
    %cst_60 = arith.constant dense<0.000000e+00> : vector<8x8xf32>
    %112 = tpu.matmul %110, %111, %cst_60 {dimension_numbers = #tpu.dot_dimension_numbers<[1], [1], [0], [0], [0, 0, 1, 0], [], []>} : vector<8x64xbf16>, vector<8x64xbf16>, vector<8x8xf32> -> vector<8x8xf32>
    %cst_61 = arith.constant 1.250000e-01 : f32
    %113 = vector.broadcast %cst_61 : f32 to vector<8x8xf32>
    %114 = arith.mulf %112, %113 : vector<8x8xf32>
    %cst_62 = arith.constant 5.000000e-01 : f32
    %115 = vector.broadcast %cst_62 : f32 to vector<1x8xf32>
    %116 = arith.cmpf ogt, %5, %115 : vector<1x8xf32>
    %cst_63 = arith.constant -1.000000e+30 : f32
    %117 = vector.shape_cast %116 : vector<1x8xi1> to vector<1x8xi1>
    %118 = vector.broadcast %117 : vector<1x8xi1> to vector<8x8xi1>
    %119 = vector.broadcast %cst_63 : f32 to vector<8x8xf32>
    %120 = arith.select %118, %114, %119 : vector<8x8xi1>, vector<8x8xf32>
    %cst_64 = arith.constant dense<0xFF800000> : vector<8xf32>
    %121 = vector.multi_reduction <maximumf>, %120, %cst_64 [1] : vector<8x8xf32> to vector<8xf32>
    %122 = vector.shape_cast %121 : vector<8xf32> to vector<8x1xf32>
    %123 = vector.broadcast %122 : vector<8x1xf32> to vector<8x8xf32>
    %124 = arith.subf %120, %123 : vector<8x8xf32>
    %125 = math.exp %124 : vector<8x8xf32>
    %cst_65 = arith.constant dense<0.000000e+00> : vector<8xf32>
    %126 = vector.multi_reduction <add>, %125, %cst_65 [1] : vector<8x8xf32> to vector<8xf32>
    %127 = vector.shape_cast %126 : vector<8xf32> to vector<8x1xf32>
    %128 = vector.broadcast %127 : vector<8x1xf32> to vector<8x8xf32>
    %129 = arith.divf %125, %128 : vector<8x8xf32>
    %130 = arith.truncf %129 : vector<8x8xf32> to vector<8x8xbf16>
    %131 = vector.extract_strided_slice %60 {offsets = [0, 64], sizes = [8, 64], strides = [1, 1]} : vector<8x128xbf16> to vector<8x64xbf16>
    %cst_66 = arith.constant dense<0.000000e+00> : vector<8x64xf32>
    %132 = tpu.matmul %130, %131, %cst_66 {dimension_numbers = #tpu.dot_dimension_numbers<[1], [0], [0], [1], [0, 0, 1, 1], [], []>} : vector<8x8xbf16>, vector<8x64xbf16>, vector<8x64xf32> -> vector<8x64xf32>
    %133 = arith.truncf %132 : vector<8x64xf32> to vector<8x64xbf16>
    %134 = vector.extract_strided_slice %63 {offsets = [64, 0], sizes = [64, 128], strides = [1, 1]} : vector<128x128xbf16> to vector<64x128xbf16>
    %cst_67 = arith.constant dense<0.000000e+00> : vector<8x128xf32>
    %135 = tpu.matmul %133, %134, %cst_67 {dimension_numbers = #tpu.dot_dimension_numbers<[1], [0], [0], [1], [0, 0, 1, 1], [], []>} : vector<8x64xbf16>, vector<64x128xbf16>, vector<8x128xf32> -> vector<8x128xf32>
    %136 = arith.addf %107, %135 : vector<8x128xf32>
    %c0_68 = arith.constant 0 : index
    %c0_69 = arith.constant 0 : index
    %c0_70 = arith.constant 0 : index
    %137 = vector.load %arg17[%c0_68, %c0_69, %c0_70] : memref<1x1x128xf32, #tpu.memory_space<vmem>>, vector<1x1x128xf32>
    %138 = vector.shape_cast %137 : vector<1x1x128xf32> to vector<1x128xf32>
    %139 = vector.broadcast %138 : vector<1x128xf32> to vector<8x128xf32>
    %140 = arith.addf %136, %139 : vector<8x128xf32>
    %141 = vector.broadcast %7 : vector<8x1xf32> to vector<8x128xf32>
    %142 = arith.mulf %140, %141 : vector<8x128xf32>
    %143 = vector.broadcast %12 : vector<1x128xf32> to vector<8x128xf32>
    %144 = arith.mulf %143, %142 : vector<8x128xf32>
    %145 = arith.addf %3, %144 : vector<8x128xf32>
    %cst_71 = arith.constant dense<0.000000e+00> : vector<8xf32>
    %146 = vector.multi_reduction <add>, %145, %cst_71 [1] : vector<8x128xf32> to vector<8xf32>
    %147 = vector.shape_cast %146 : vector<8xf32> to vector<8x1xf32>
    %cst_72 = arith.constant 1.280000e+02 : f32
    %148 = vector.broadcast %cst_72 : f32 to vector<8x1xf32>
    %149 = arith.divf %147, %148 : vector<8x1xf32>
    %150 = vector.broadcast %149 : vector<8x1xf32> to vector<8x128xf32>
    %151 = arith.subf %145, %150 : vector<8x128xf32>
    %152 = arith.mulf %151, %151 : vector<8x128xf32>
    %cst_73 = arith.constant dense<0.000000e+00> : vector<8xf32>
    %153 = vector.multi_reduction <add>, %152, %cst_73 [1] : vector<8x128xf32> to vector<8xf32>
    %154 = vector.shape_cast %153 : vector<8xf32> to vector<8x1xf32>
    %cst_74 = arith.constant 1.280000e+02 : f32
    %155 = vector.broadcast %cst_74 : f32 to vector<8x1xf32>
    %156 = arith.divf %154, %155 : vector<8x1xf32>
    %cst_75 = arith.constant 9.99999997E-7 : f32
    %157 = vector.broadcast %cst_75 : f32 to vector<8x1xf32>
    %158 = arith.addf %156, %157 : vector<8x1xf32>
    %159 = math.rsqrt %158 : vector<8x1xf32>
    %160 = vector.broadcast %159 : vector<8x1xf32> to vector<8x128xf32>
    %161 = arith.mulf %151, %160 : vector<8x128xf32>
    %cst_76 = arith.constant 1.000000e+00 : f32
    %162 = vector.broadcast %cst_76 : f32 to vector<1x128xf32>
    %163 = arith.addf %162, %14 : vector<1x128xf32>
    %164 = vector.broadcast %163 : vector<1x128xf32> to vector<8x128xf32>
    %165 = arith.mulf %161, %164 : vector<8x128xf32>
    %166 = vector.broadcast %13 : vector<1x128xf32> to vector<8x128xf32>
    %167 = arith.addf %165, %166 : vector<8x128xf32>
    %168 = arith.truncf %167 : vector<8x128xf32> to vector<8x128xbf16>
    %c0_77 = arith.constant 0 : index
    %c0_78 = arith.constant 0 : index
    %c0_79 = arith.constant 0 : index
    %169 = vector.load %arg18[%c0_77, %c0_78, %c0_79] : memref<1x128x256xbf16, #tpu.memory_space<vmem>>, vector<1x128x256xbf16>
    %170 = vector.shape_cast %169 : vector<1x128x256xbf16> to vector<128x256xbf16>
    %cst_80 = arith.constant dense<0.000000e+00> : vector<8x256xf32>
    %171 = tpu.matmul %168, %170, %cst_80 {dimension_numbers = #tpu.dot_dimension_numbers<[1], [0], [0], [1], [0, 0, 1, 1], [], []>} : vector<8x128xbf16>, vector<128x256xbf16>, vector<8x256xf32> -> vector<8x256xf32>
    %c0_81 = arith.constant 0 : index
    %c0_82 = arith.constant 0 : index
    %c0_83 = arith.constant 0 : index
    %172 = vector.load %arg19[%c0_81, %c0_82, %c0_83] : memref<1x1x256xf32, #tpu.memory_space<vmem>>, vector<1x1x256xf32>
    %173 = vector.shape_cast %172 : vector<1x1x256xf32> to vector<1x256xf32>
    %174 = vector.broadcast %173 : vector<1x256xf32> to vector<8x256xf32>
    %175 = arith.addf %171, %174 : vector<8x256xf32>
    %176 = arith.mulf %175, %175 : vector<8x256xf32>
    %177 = arith.mulf %175, %176 : vector<8x256xf32>
    %cst_84 = arith.constant 4.471500e-02 : f32
    %178 = vector.broadcast %cst_84 : f32 to vector<8x256xf32>
    %179 = arith.mulf %178, %177 : vector<8x256xf32>
    %180 = arith.addf %175, %179 : vector<8x256xf32>
    %cst_85 = arith.constant 0.797884583 : f32
    %181 = vector.broadcast %cst_85 : f32 to vector<8x256xf32>
    %182 = arith.mulf %181, %180 : vector<8x256xf32>
    %183 = math.tanh %182 : vector<8x256xf32>
    %cst_86 = arith.constant 1.000000e+00 : f32
    %184 = vector.broadcast %cst_86 : f32 to vector<8x256xf32>
    %185 = arith.addf %184, %183 : vector<8x256xf32>
    %cst_87 = arith.constant 5.000000e-01 : f32
    %186 = vector.broadcast %cst_87 : f32 to vector<8x256xf32>
    %187 = arith.mulf %186, %185 : vector<8x256xf32>
    %188 = arith.mulf %175, %187 : vector<8x256xf32>
    %189 = arith.truncf %188 : vector<8x256xf32> to vector<8x256xbf16>
    %c0_88 = arith.constant 0 : index
    %c0_89 = arith.constant 0 : index
    %c0_90 = arith.constant 0 : index
    %190 = vector.load %arg20[%c0_88, %c0_89, %c0_90] : memref<1x256x128xbf16, #tpu.memory_space<vmem>>, vector<1x256x128xbf16>
    %191 = vector.shape_cast %190 : vector<1x256x128xbf16> to vector<256x128xbf16>
    %cst_91 = arith.constant dense<0.000000e+00> : vector<8x128xf32>
    %192 = tpu.matmul %189, %191, %cst_91 {dimension_numbers = #tpu.dot_dimension_numbers<[1], [0], [0], [1], [0, 0, 1, 1], [], []>} : vector<8x256xbf16>, vector<256x128xbf16>, vector<8x128xf32> -> vector<8x128xf32>
    %c0_92 = arith.constant 0 : index
    %c0_93 = arith.constant 0 : index
    %c0_94 = arith.constant 0 : index
    %193 = vector.load %arg21[%c0_92, %c0_93, %c0_94] : memref<1x1x128xf32, #tpu.memory_space<vmem>>, vector<1x1x128xf32>
    %194 = vector.shape_cast %193 : vector<1x1x128xf32> to vector<1x128xf32>
    %195 = vector.broadcast %194 : vector<1x128xf32> to vector<8x128xf32>
    %196 = arith.addf %192, %195 : vector<8x128xf32>
    %197 = vector.broadcast %15 : vector<1x128xf32> to vector<8x128xf32>
    %198 = arith.mulf %197, %196 : vector<8x128xf32>
    %199 = arith.addf %145, %198 : vector<8x128xf32>
    %c0_95 = arith.constant 0 : index
    %c0_96 = arith.constant 0 : index
    %200 = vector.load %arg25[%c0_95, %c0_96] : memref<8x128xf32, #tpu.memory_space<vmem>>, vector<8x128xf32>
    tpu.vector_store %arg25[%c0_95, %c0_96], %199 {strides = array<i32>} : memref<8x128xf32, #tpu.memory_space<vmem>>, vector<8x128xf32>,
    %c1_i32 = arith.constant 1 : i32
    %201 = arith.cmpi eq, %arg1, %c1_i32 : i32
    %202 = arith.extui %201 : i1 to i32
    %c0_i32_97 = arith.constant 0 : i32
    %203 = arith.cmpi ne, %202, %c0_i32_97 : i32
    scf.if %203 {
      %c0_98 = arith.constant 0 : index
      %c0_99 = arith.constant 0 : index
      %c0_100 = arith.constant 0 : index
      %204 = vector.load %arg9[%c0_98, %c0_99, %c0_100] : memref<1x2x128xf32, #tpu.memory_space<vmem>>, vector<1x2x128xf32>
      %205 = vector.shape_cast %204 : vector<1x2x128xf32> to vector<2x128xf32>
      %206 = vector.extract_strided_slice %205 {offsets = [0, 0], sizes = [1, 128], strides = [1, 1]} : vector<2x128xf32> to vector<1x128xf32>
      %207 = vector.extract_strided_slice %205 {offsets = [1, 0], sizes = [1, 128], strides = [1, 1]} : vector<2x128xf32> to vector<1x128xf32>
      %cst_101 = arith.constant dense<0.000000e+00> : vector<8xf32>
      %208 = vector.multi_reduction <add>, %199, %cst_101 [1] : vector<8x128xf32> to vector<8xf32>
      %209 = vector.shape_cast %208 : vector<8xf32> to vector<8x1xf32>
      %cst_102 = arith.constant 1.280000e+02 : f32
      %210 = vector.broadcast %cst_102 : f32 to vector<8x1xf32>
      %211 = arith.divf %209, %210 : vector<8x1xf32>
      %212 = vector.broadcast %211 : vector<8x1xf32> to vector<8x128xf32>
      %213 = arith.subf %199, %212 : vector<8x128xf32>
      %214 = arith.mulf %213, %213 : vector<8x128xf32>
      %cst_103 = arith.constant dense<0.000000e+00> : vector<8xf32>
      %215 = vector.multi_reduction <add>, %214, %cst_103 [1] : vector<8x128xf32> to vector<8xf32>
      %216 = vector.shape_cast %215 : vector<8xf32> to vector<8x1xf32>
      %cst_104 = arith.constant 1.280000e+02 : f32
      %217 = vector.broadcast %cst_104 : f32 to vector<8x1xf32>
      %218 = arith.divf %216, %217 : vector<8x1xf32>
      %cst_105 = arith.constant 9.99999997E-7 : f32
      %219 = vector.broadcast %cst_105 : f32 to vector<8x1xf32>
      %220 = arith.addf %218, %219 : vector<8x1xf32>
      %221 = math.rsqrt %220 : vector<8x1xf32>
      %222 = vector.broadcast %221 : vector<8x1xf32> to vector<8x128xf32>
      %223 = arith.mulf %213, %222 : vector<8x128xf32>
      %cst_106 = arith.constant 1.000000e+00 : f32
      %224 = vector.broadcast %cst_106 : f32 to vector<1x128xf32>
      %225 = arith.addf %224, %206 : vector<1x128xf32>
      %226 = vector.broadcast %225 : vector<1x128xf32> to vector<8x128xf32>
      %227 = arith.mulf %223, %226 : vector<8x128xf32>
      %228 = vector.broadcast %207 : vector<1x128xf32> to vector<8x128xf32>
      %229 = arith.addf %227, %228 : vector<8x128xf32>
      %230 = arith.truncf %229 : vector<8x128xf32> to vector<8x128xbf16>
      %c0_107 = arith.constant 0 : index
      %c0_108 = arith.constant 0 : index
      %231 = vector.load %arg22[%c0_107, %c0_108] : memref<128x16xbf16, #tpu.memory_space<vmem>>, vector<128x16xbf16>
      %cst_109 = arith.constant dense<0.000000e+00> : vector<8x16xf32>
      %232 = tpu.matmul %230, %231, %cst_109 {dimension_numbers = #tpu.dot_dimension_numbers<[1], [0], [0], [1], [0, 0, 1, 1], [], []>} : vector<8x128xbf16>, vector<128x16xbf16>, vector<8x16xf32> -> vector<8x16xf32>
      %c0_110 = arith.constant 0 : index
      %c0_111 = arith.constant 0 : index
      %233 = vector.load %arg23[%c0_110, %c0_111] : memref<1x16xf32, #tpu.memory_space<vmem>>, vector<1x16xf32>
      %234 = vector.broadcast %233 : vector<1x16xf32> to vector<8x16xf32>
      %235 = arith.addf %232, %234 : vector<8x16xf32>
      %236 = vector.shape_cast %235 : vector<8x16xf32> to vector<1x8x16xf32>
      %c0_112 = arith.constant 0 : index
      %c0_113 = arith.constant 0 : index
      %c0_114 = arith.constant 0 : index
      %237 = vector.load %arg24[%c0_112, %c0_113, %c0_114] : memref<1x8x16xf32, #tpu.memory_space<vmem>>, vector<1x8x16xf32>
      tpu.vector_store %arg24[%c0_112, %c0_113, %c0_114], %236 {strides = array<i32>} : memref<1x8x16xf32, #tpu.memory_space<vmem>>, vector<1x8x16xf32>,
    } else {
    }
    return
  }
  func.func @transform_0(%arg0: i32, %arg1: i32) -> (i32, i32, i32) {
    %c0_i32 = arith.constant 0 : i32
    %c0_i32_0 = arith.constant 0 : i32
    %c0_i32_1 = arith.constant 0 : i32
    return %arg0, %c0_i32, %c0_i32_0 : i32, i32, i32
  }
  func.func @transform_1(%arg0: i32, %arg1: i32) -> (i32, i32, i32) {
    %c0_i32 = arith.constant 0 : i32
    %c0_i32_0 = arith.constant 0 : i32
    %c0_i32_1 = arith.constant 0 : i32
    return %arg0, %c0_i32, %c0_i32_0 : i32, i32, i32
  }
  func.func @transform_2(%arg0: i32, %arg1: i32) -> (i32, i32, i32) {
    %c0_i32 = arith.constant 0 : i32
    %c0_i32_0 = arith.constant 0 : i32
    %c0_i32_1 = arith.constant 0 : i32
    return %arg0, %c0_i32, %c0_i32_0 : i32, i32, i32
  }
  func.func @transform_3(%arg0: i32, %arg1: i32) -> (i32, i32, i32) {
    %c0_i32 = arith.constant 0 : i32
    %c0_i32_0 = arith.constant 0 : i32
    %c0_i32_1 = arith.constant 0 : i32
    %c0_i32_2 = arith.constant 0 : i32
    return %c0_i32, %c0_i32_0, %c0_i32_1 : i32, i32, i32
  }
  func.func @transform_4(%arg0: i32, %arg1: i32) -> (i32, i32, i32) {
    %c0_i32 = arith.constant 0 : i32
    %c0_i32_0 = arith.constant 0 : i32
    %c0_i32_1 = arith.constant 0 : i32
    %c0_i32_2 = arith.constant 0 : i32
    return %c0_i32, %c0_i32_0, %c0_i32_1 : i32, i32, i32
  }
  func.func @transform_5(%arg0: i32, %arg1: i32) -> (i32, i32) {
    %c0_i32 = arith.constant 0 : i32
    %c0_i32_0 = arith.constant 0 : i32
    %c0_i32_1 = arith.constant 0 : i32
    return %c0_i32, %c0_i32_0 : i32, i32
  }
  func.func @transform_6(%arg0: i32, %arg1: i32) -> (i32, i32, i32, i32) {
    %c0_i32 = arith.constant 0 : i32
    %c0_i32_0 = arith.constant 0 : i32
    %c0_i32_1 = arith.constant 0 : i32
    return %arg1, %arg0, %c0_i32, %c0_i32_0 : i32, i32, i32, i32
  }
  func.func @transform_7(%arg0: i32, %arg1: i32) -> (i32, i32, i32) {
    %c0_i32 = arith.constant 0 : i32
    %c0_i32_0 = arith.constant 0 : i32
    %c0_i32_1 = arith.constant 0 : i32
    return %arg0, %c0_i32, %c0_i32_0 : i32, i32, i32
  }
  func.func @transform_8(%arg0: i32, %arg1: i32) -> (i32, i32, i32) {
    %c0_i32 = arith.constant 0 : i32
    %c0_i32_0 = arith.constant 0 : i32
    %c0_i32_1 = arith.constant 0 : i32
    return %arg1, %c0_i32, %c0_i32_0 : i32, i32, i32
  }
  func.func @transform_9(%arg0: i32, %arg1: i32) -> (i32, i32, i32) {
    %c0_i32 = arith.constant 0 : i32
    %c0_i32_0 = arith.constant 0 : i32
    %c0_i32_1 = arith.constant 0 : i32
    return %arg1, %c0_i32, %c0_i32_0 : i32, i32, i32
  }
  func.func @transform_10(%arg0: i32, %arg1: i32) -> (i32, i32, i32) {
    %c0_i32 = arith.constant 0 : i32
    %c0_i32_0 = arith.constant 0 : i32
    %c0_i32_1 = arith.constant 0 : i32
    return %arg1, %c0_i32, %c0_i32_0 : i32, i32, i32
  }
  func.func @transform_11(%arg0: i32, %arg1: i32) -> (i32, i32, i32) {
    %c0_i32 = arith.constant 0 : i32
    %c0_i32_0 = arith.constant 0 : i32
    %c0_i32_1 = arith.constant 0 : i32
    return %arg1, %c0_i32, %c0_i32_0 : i32, i32, i32
  }
  func.func @transform_12(%arg0: i32, %arg1: i32) -> (i32, i32, i32) {
    %c0_i32 = arith.constant 0 : i32
    %c0_i32_0 = arith.constant 0 : i32
    %c0_i32_1 = arith.constant 0 : i32
    return %arg1, %c0_i32, %c0_i32_0 : i32, i32, i32
  }
  func.func @transform_13(%arg0: i32, %arg1: i32) -> (i32, i32, i32) {
    %c0_i32 = arith.constant 0 : i32
    %c0_i32_0 = arith.constant 0 : i32
    %c0_i32_1 = arith.constant 0 : i32
    return %arg1, %c0_i32, %c0_i32_0 : i32, i32, i32
  }
  func.func @transform_14(%arg0: i32, %arg1: i32) -> (i32, i32, i32) {
    %c0_i32 = arith.constant 0 : i32
    %c0_i32_0 = arith.constant 0 : i32
    %c0_i32_1 = arith.constant 0 : i32
    return %arg1, %c0_i32, %c0_i32_0 : i32, i32, i32
  }
  func.func @transform_15(%arg0: i32, %arg1: i32) -> (i32, i32, i32) {
    %c0_i32 = arith.constant 0 : i32
    %c0_i32_0 = arith.constant 0 : i32
    %c0_i32_1 = arith.constant 0 : i32
    return %arg1, %c0_i32, %c0_i32_0 : i32, i32, i32
  }
  func.func @transform_16(%arg0: i32, %arg1: i32) -> (i32, i32, i32) {
    %c0_i32 = arith.constant 0 : i32
    %c0_i32_0 = arith.constant 0 : i32
    %c0_i32_1 = arith.constant 0 : i32
    return %arg1, %c0_i32, %c0_i32_0 : i32, i32, i32
  }
  func.func @transform_17(%arg0: i32, %arg1: i32) -> (i32, i32, i32) {
    %c0_i32 = arith.constant 0 : i32
    %c0_i32_0 = arith.constant 0 : i32
    %c0_i32_1 = arith.constant 0 : i32
    return %arg1, %c0_i32, %c0_i32_0 : i32, i32, i32
  }
  func.func @transform_18(%arg0: i32, %arg1: i32) -> (i32, i32, i32) {
    %c0_i32 = arith.constant 0 : i32
    %c0_i32_0 = arith.constant 0 : i32
    %c0_i32_1 = arith.constant 0 : i32
    return %arg1, %c0_i32, %c0_i32_0 : i32, i32, i32
  }
  func.func @transform_19(%arg0: i32, %arg1: i32) -> (i32, i32, i32) {
    %c0_i32 = arith.constant 0 : i32
    %c0_i32_0 = arith.constant 0 : i32
    %c0_i32_1 = arith.constant 0 : i32
    return %arg1, %c0_i32, %c0_i32_0 : i32, i32, i32
  }
  func.func @transform_20(%arg0: i32, %arg1: i32) -> (i32, i32) {
    %c0_i32 = arith.constant 0 : i32
    %c0_i32_0 = arith.constant 0 : i32
    %c0_i32_1 = arith.constant 0 : i32
    return %c0_i32, %c0_i32_0 : i32, i32
  }
  func.func @transform_21(%arg0: i32, %arg1: i32) -> (i32, i32) {
    %c0_i32 = arith.constant 0 : i32
    %c0_i32_0 = arith.constant 0 : i32
    %c0_i32_1 = arith.constant 0 : i32
    return %c0_i32, %c0_i32_0 : i32, i32
  }
  func.func @transform_22(%arg0: i32, %arg1: i32) -> (i32, i32, i32) {
    %c0_i32 = arith.constant 0 : i32
    %c0_i32_0 = arith.constant 0 : i32
    %c0_i32_1 = arith.constant 0 : i32
    return %arg0, %c0_i32, %c0_i32_0 : i32, i32, i32
  }
}

</mosaic_0001>

<bundles_post_ra>
// kernel: tpu_custom_call.1
= control target key start
LH: loop header
LB: loop body
LE: loop exit
PB: predicated region body
PF: predicated region fallthrough
CT: control target
= control target key end

     0   :  { %s4100_s0 = inlined_call_operand.vmem [shape: f32[2,8,128], index: 0, kind: input, shape index: {}]   ;;  %s4101_s1 = inlined_call_operand.vmem [shape: f32[2,1,8], index: 1, kind: input, shape index: {}]   ;;  %s4102_s2 = inlined_call_operand.vmem [shape: f32[2,8,1], index: 2, kind: input, shape index: {}]   ;;  %s4103_s3 = inlined_call_operand.vmem [shape: f32[2,8,64], index: 3, kind: input, shape index: {}]   ;;  %s4104_s4 = inlined_call_operand.vmem [shape: f32[2,8,64], index: 4, kind: input, shape index: {}]   ;;  %s4105_s5 = inlined_call_operand.vmem [shape: bf16[64,64], index: 5, kind: input, shape index: {}]   ;;  %s4106_s6 = inlined_call_operand.vmem [shape: f32[2,2,6,128], index: 6, kind: input, shape index: {}]   ;;  %s4107_s7 = inlined_call_operand.vmem [shape: f32[2,2,128], index: 7, kind: input, shape index: {}]   ;;  %s4108_s8 = inlined_call_operand.hbm [shape: bf16[2,128,128], index: 8, kind: input, shape index: {}]   ;;  %s4109_s9 = inlined_call_operand.vmem [shape: f32[2,1,128], index: 9, kind: input, shape index: {}]   ;;  %s4110_s10 = inlined_call_operand.hbm [shape: bf16[2,128,128], index: 10, kind: input, shape index: {}]   ;;  %s4111_s11 = inlined_call_operand.vmem [shape: f32[2,1,128], index: 11, kind: input, shape index: {}]   ;;  %s4112_s12 = inlined_call_operand.hbm [shape: bf16[2,128,128], index: 12, kind: input, shape index: {}]   ;;  %s4113_s13 = inlined_call_operand.vmem [shape: f32[2,1,128], index: 13, kind: input, shape index: {}]   ;;  %s4114_s14 = inlined_call_operand.hbm [shape: bf16[2,128,128], index: 14, kind: input, shape index: {}]   ;;  %s4115_s15 = inlined_call_operand.vmem [shape: f32[2,1,128], index: 15, kind: input, shape index: {}]   ;;  %s4116_s16 = inlined_call_operand.hbm [shape: bf16[2,128,256], index: 16, kind: input, shape index: {}]   ;;  %s4117_s17 = inlined_call_operand.vmem [shape: f32[2,1,256], index: 17, kind: input, shape index: {}]   ;;  %s4118_s18 = inlined_call_operand.hbm [shape: bf16[2,256,128], index: 18, kind: input, shape index: {}]   ;;  %s4119_s19 = inlined_call_operand.vmem [shape: f32[2,1,128], index: 19, kind: input, shape index: {}]   ;;  %s4120_s20 = inlined_call_operand.vmem [shape: bf16[128,16], index: 20, kind: input, shape index: {}]   ;;  %s4121_s21 = inlined_call_operand.vmem [shape: f32[1,16], index: 21, kind: input, shape index: {}]   ;;  %s4122_s22 = inlined_call_operand.hbm [shape: f32[2,8,16], index: 22, kind: output, shape index: {}]  }
   0x1   :  { %4146 = sst [smem:[#allocation40_spill]] %s4100_s0 }
   0x2   :  { %4147 = sst [smem:[#allocation41_spill]] %s4101_s1 }
   0x3   :  { %4148 = sst [smem:[#allocation42_spill]] %s4102_s2 }
   0x4   :  { %4149 = sst [smem:[#allocation43_spill]] %s4103_s3 }
   0x5   :  { %4150 = sst [smem:[#allocation44_spill]] %s4104_s4 }
   0x6   :  { %4151 = sst [smem:[#allocation45_spill]] %s4105_s5 }
   0x7   :  { %4152 = sst [smem:[#allocation46_spill]] %s4106_s6 }
   0x8   :  { %4153 = sst [smem:[#allocation47_spill]] %s4107_s7 }
   0x9   :  { %4154 = sst [smem:[#allocation48_spill]] %s4108_s8 }
   0xa   :  { %4155 = sst [smem:[#allocation49_spill]] %s4109_s9 }
   0xb   :  { %4156 = sst [smem:[#allocation50_spill]] %s4110_s10 }
   0xc   :  { %4157 = sst [smem:[#allocation51_spill]] %s4111_s11 }
   0xd   :  { %4158 = sst [smem:[#allocation52_spill]] %s4112_s12 }
   0xe   :  { %4159 = sst [smem:[#allocation53_spill]] %s4113_s13 }
   0xf   :  { %4160 = sst [smem:[#allocation54_spill]] %s4114_s14 }
  0x10   :  { %4161 = sst [smem:[#allocation55_spill]] %s4115_s15 }
  0x11   :  { %4162 = sst [smem:[#allocation56_spill]] %s4116_s16 }
  0x12   :  { %4163 = sst [smem:[#allocation57_spill]] %s4117_s17 }
  0x13   :  { %4164 = sst [smem:[#allocation58_spill]] %s4118_s18 }
  0x14   :  { %4165 = sst [smem:[#allocation59_spill]] %s4119_s19 }
  0x15   :  { %4166 = sst [smem:[#allocation60_spill]] %s4120_s20 }
  0x16   :  { %4167 = sst [smem:[#allocation61_spill]] %s4121_s21 }
  0x17   :  { %4168 = sst [smem:[#allocation62_spill]] %s4122_s22 }
  0x18   :  { %27 = vsyncpa [#allocation4], 0 }
  0x19   :  { %29 = vsyncpa [#allocation4 + $0x1], 0 }
  0x1a   :  { %30 = vsyncpa [#allocation7], 0 }
  0x1b   :  { %32 = vsyncpa [#allocation7 + $0x1], 0 }
  0x1c   :  { %33 = vsyncpa [#allocation10], 0 }
  0x1d   :  { %35 = vsyncpa [#allocation10 + $0x1], 0 }
  0x1e   :  { %36 = vsyncpa [#allocation13], 0 }
  0x1f   :  { %38 = vsyncpa [#allocation13 + $0x1], 0 }
  0x20   :  { %39 = vsyncpa [#allocation5], 0 }
  0x21   :  { %41 = vsyncpa [#allocation5 + $0x1], 0  ;;  %s3537_s3 = smov 0   ;;  %s3539_s28 = smov 0  }
  0x22   :  { %s3541_s29 = smov 0   ;;  %s3543_s30 = smov 0  }
  0x23   :  { %s3545_s4 = smov 0   ;;  %s3547_s0 = smov 0  }
  0x24   :  { %s3549_s23 = smov 0   ;;  %s3551_s1 = smov 0  }
  0x25   :  { %s3553_s5 = smov 0   ;;  %s3555_s24 = smov 0  }
  0x26   :  { %s3557_s6 = smov 0  }
  0x27 LB: > { %4169 = sst [smem:[#allocation20_spill]] %s3373_s3  ;;  %s3591_s25 = sadd.s32 4294967295, %s3413_s6   ;;  %s3413_s6 = sphi %s3557_s6, %s47_s6   ;;  %s3409_s24 = sphi %s3555_s24, %s4249_s24   ;;  %s3405_s5 = sphi %s3553_s5, %s4248_s5   ;;  %s3401_s1 = sphi %s3551_s1, %s4247_s1   ;;  %s3397_s23 = sphi %s3549_s23, %s4246_s23   ;;  %s3393_s0 = sphi %s3547_s0, %s4245_s0   ;;  %s3389_s4 = sphi %s3545_s4, %s4244_s4   ;;  %s3385_s30 = sphi %s3543_s30, %s4243_s30   ;;  %s3381_s29 = sphi %s3541_s29, %s4242_s29   ;;  %s3377_s28 = sphi %s3539_s28, %s4241_s28   ;;  %s3373_s3 = sphi %s3537_s3, %s4240_s3  }
  0x28   : > { %4170 = sst [smem:[#allocation21_spill]] %s3377_s28  ;;  %s2503_s26 = sadd.s32 4294967294, %s3413_s6  }
  0x29   : > { %4171 = sst [smem:[#allocation22_spill]] %s3381_s29  ;;  %s56_s2 = sadd.s32 1, %s3405_s5 }
  0x2a   : > { %4172 = sst [smem:[#allocation23_spill]] %s3389_s4  ;;  %s59_s27 = sadd.s32 1, %s3409_s24 }
  0x2b   : > { %4173 = sst [smem:[#allocation24_spill]] %s3393_s0  ;;  %p57_p0 = scmp.ge.s32.totalorder %s56_s2, 2 }
  0x2c   : > { %4174 = sst [smem:[#allocation25_spill]] %s3401_s1  ;;  %s261_s22 = sadd.s32 1, %s3393_s0 }
  0x2d   : > { %4175 = sst [smem:[#allocation26_spill]] %s3405_s5  ;;  %p268_p1 = scmp.ne.s32.totalorder %s3393_s0, %s3389_s4 }
  0x2e   : > { %4176 = sst [smem:[#allocation27_spill]] %s3409_s24  ;;  %p269_p2 = scmp.eq.s32.totalorder %s3413_s6, 0 }
  0x2f   : > { %4177 = sst [smem:[#allocation28_spill]] %s3413_s6  ;;  %s4251_s2 = smov (%p57_p0, %s56_s2), 0 }
  0x30   : > { %4178 = sst [smem:[#allocation29_spill]] %s4251_s2  ;;  %s4253_s27 = smov (!%p57_p0, %s59_s27), %s3409_s24 }
  0x31   : > { %s258_s21 = ssub.s32 %s3405_s5, %s4251_s2  ;;  %p3605_p3 = por %p269_p2, %p268_p1 }
  0x32   : > { %p61_p4 = scmp.ge.s32.totalorder %s4253_s27, 2  ;;  %p259_p5 = scmp.eq.s32.totalorder %s258_s21, 0 }
  0x33   : > { %p274_p6 = scmp.ne.s32.totalorder %s3389_s4, %s3385_s30  ;;  %p275_p7 = scmp.eq.s32.totalorder %s3591_s25, 0 }
  0x34   : > { %s4255_s27 = smov (%p61_p4, %s4253_s27), 0  ;;  %s615_s15 = sadd.s32 1, %s3381_s29 }
  0x35   : > { %4180 = sst [smem:[#allocation30_spill]] %s4255_s27  ;;  %p3616_p8 = por %p275_p7, %p274_p6 }
  0x36   : > { %s3614_s19 = scalar_select %p259_p5, %s3393_s0, %s261_s22  }
  0x37   : > { %s612_s17 = ssub.s32 %s3409_s24, %s4255_s27  ;;  %p625_p10 = scmp.ne.s32.totalorder %s3381_s29, %s3377_s28 }
  0x38   : > { %4181 = sst [smem:[#allocation31_spill]] %s3614_s19  ;;  %p613_p9 = scmp.eq.s32.totalorder %s612_s17, 0 }
  0x39   : > { %p626_p11 = scmp.eq.s32.totalorder %s3591_s25, 3  ;;  %p631_p13 = scmp.ne.s32.totalorder %s3377_s28, %s3373_s3 }
  0x3a   : > { %s3627_s21 = scalar_select %p613_p9, %s3381_s29, %s615_s15  }
  0x3b   : > { %p3629_p12 = por %p626_p11, %p625_p10  ;;  %p632_p0 = scmp.eq.s32.totalorder %s2503_s26, 3 }
  0x3c   : > { %4183 = sst [smem:[#allocation32_spill]] %s3627_s21  ;;  %p2975_p1 = scmp.lt.s32.totalorder %s3413_s6, 4 }
  0x3d   : > { %s4184_s30 = scalar_select %p3629_p12, 1, 0 }
  0x3e   : > { %s3637_s22 = sand.u32 1, %s3393_s0   ;;  %p3639_p2 = por %p632_p0, %p631_p13 }
  0x3f   : > { %4185 = sst [smem:[#allocation33_spill]] %s4184_s30  ;;  %s3644_s17 = sshll.u32 %s3637_s22, 6 }
  0x40   : > { %s4186_s19 = scalar_select %p3639_p2, 1, 0 }
  0x41   : > { %s3647_s15 = sshll.u32 %s3405_s5, 6  ;;  %p3651_p4 = pnand %p2975_p1, %p3605_p3 }
  0x42   : > { %4187 = sst [smem:[#allocation34_spill]] %s4186_s19  ;;  %s733_s26 = sand.u32 1, %s3413_s6  }
  0x43   : > { %s4189_s10 = sld [smem:[#allocation50_spill]]  ;;  %s737_s29 = scalar_lea.vmem [#allocation6], %s3644_s17 }
  0x44   : > { %s745_s19 = sshll.u32 %s737_s29, 4  ;;  %p2524_p5 = scmp.ge.s32.totalorder %s3413_s6, 1  ;;  %s746_s19 = int_to_ptr.vmem [resolvable:$true] %s745_s19 }
  0x45   : > { %s3662_s20 = scalar_lea.sflag [#allocation7], %s733_s26  ;;  %s4137_s30 = smov 64  }
  0x46   : > { %s3416_s13 = smov 4   ;;  %p872_p3 = scmp.lt.s32.totalorder %s3413_s6, 5 }
  0x47   : > { %s4190_s14 = sld [smem:[#allocation54_spill]]  ;;  %s793_s11 = scalar_lea.vmem [#allocation9], %s3644_s17 }
  0x48   : > { %p3675_p6 = pnand %p2524_p5, %p872_p3  ;;  %s801_s9 = sshll.u32 %s793_s11, 4  ;;  %s802_s9 = int_to_ptr.vmem [resolvable:$true] %s801_s9 }
  0x49   : > { %s742_s21 = scalar_lea.hbm %s4189_s10, %s3647_s15  ;;  %s3680_s7 = scalar_lea.sflag [#allocation10], %s733_s26 }
  0x4a   : > { %s743_s3 = sshll.u32 %s742_s21, 4  ;;  %s4192_s8 = sld [smem:[#allocation48_spill]]  ;;  %s744_s3 = int_to_ptr.hbm [resolvable:$true] %s743_s3 }
  0x4b   : > { %2958 = dma.hbm_to_vmem [thread:$0]  (!%p3651_p4), %s744_s3, 1024, %s746_s19, %s3662_s20, %s4137_s30, %s4137_s30, %s3416_s13  }
  0x4c   : > { %s706_s26 = scalar_lea.sflag [#allocation4], %s3637_s22  ;;  %s4193_s12 = sld [smem:[#allocation52_spill]] }
  0x4d   : > { %s798_s24 = scalar_lea.hbm %s4190_s14, %s3647_s15  ;;  %s765_s19 = scalar_lea.vmem [#allocation8], %s3644_s17 }
  0x4e   : > { %s799_s10 = sshll.u32 %s798_s24, 4  ;;  %s709_s24 = scalar_lea.vmem [#allocation3], %s3644_s17  ;;  %s800_s10 = int_to_ptr.hbm [resolvable:$true] %s799_s10 }
  0x4f   : > { %2964 = dma.hbm_to_vmem [thread:$0]  (!%p3651_p4), %s800_s10, 1024, %s802_s9, %s3680_s7, %s4137_s30, %s4137_s30, %s3416_s13  }
  0x50   : > { %s714_s0 = scalar_lea.hbm %s4192_s8, %s3647_s15  ;;  %s717_s11 = sshll.u32 %s709_s24, 4  ;;  %s718_s11 = int_to_ptr.vmem [resolvable:$true] %s717_s11 }
  0x51   : > { %s715_s29 = sshll.u32 %s714_s0, 4  ;;  %s773_s3 = sshll.u32 %s765_s19, 4  ;;  %s716_s29 = int_to_ptr.hbm [resolvable:$true] %s715_s29  ;;  %s774_s3 = int_to_ptr.vmem [resolvable:$true] %s773_s3 }
  0x52   : > { %2955 = dma.hbm_to_vmem [thread:$0]  (!%p3651_p4), %s716_s29, 1024, %s718_s11, %s706_s26, %s4137_s30, %s4137_s30, %s3416_s13  }
  0x53   : > { %s770_s9 = scalar_lea.hbm %s4193_s12, %s3647_s15  ;;  %s2518_s0 = sshll.u32 %s3637_s22, 7 }
  0x54   : > { %s771_s10 = sshll.u32 %s770_s9, 4  ;;  %s2860_s24 = sshll.u32 %s3405_s5, 7  ;;  %s772_s10 = int_to_ptr.hbm [resolvable:$true] %s771_s10 }
  0x55   : > { %2961 = dma.hbm_to_vmem [thread:$0]  (!%p3651_p4), %s772_s10, 1024, %s774_s3, %s3662_s20, %s4137_s30, %s4137_s30, %s3416_s13  }
  0x56   : > { %s4194_s16 = sld [smem:[#allocation56_spill]]  ;;  %s821_s15 = scalar_lea.vmem [#allocation11], %s2518_s0 }
  0x57   : > { %s829_s11 = sshll.u32 %s821_s15, 4  ;;  %s3417_s17 = smov 128   ;;  %s830_s11 = int_to_ptr.vmem [resolvable:$true] %s829_s11 }
  0x58   : > { %s3418_s26 = smov 8   ;;  %s4195_s18 = sld [smem:[#allocation58_spill]] }
  0x59   : > { %s850_s10 = scalar_lea.vmem [#allocation12], %s2518_s0  ;;  %s847_s8 = scalar_lea.sflag [#allocation13], %s3637_s22 }
  0x5a   : > { %s858_s3 = sshll.u32 %s850_s10, 4  ;;  %s4196_s29 = smov 64   ;;  %s859_s3 = int_to_ptr.vmem [resolvable:$true] %s858_s3 }
  0x5c   : > { %s826_s14 = scalar_lea.hbm %s4194_s16, %s2860_s24 }
  0x5d   : > { %s827_s6 = sshll.u32 %s826_s14, 4  ;;  %876 = sbr.rel (%p3675_p6) target bundleno = 2350 (0x92e), region = 108  ;;  %s828_s6 = int_to_ptr.hbm [resolvable:$true] %s827_s6 }
  0x5e   : > { %2967 = dma.hbm_to_vmem [thread:$0]  (!%p3651_p4), %s828_s6, 2048, %s830_s11, %s3680_s7, %s3417_s17, %s3417_s17, %s3418_s26  }
  0x5f   : > { %s855_s20 = scalar_lea.hbm %s4195_s18, %s2860_s24 }
  0x60   : > { %s856_s30 = sshll.u32 %s855_s20, 4  ;;  %s857_s30 = int_to_ptr.hbm [resolvable:$true] %s856_s30 }
  0x61   : > { %2970 = dma.hbm_to_vmem [thread:$0]  (!%p3651_p4), %s857_s30, 2048, %s859_s3, %s847_s8, %s4196_s29, %s4196_s29, %s3416_s13  }
  0x62   : > { %s878_s7 = sand.u32 1, %s3389_s4  }
  0x63   : > { %s2525_s14 = sshll.u32 %s878_s7, 6  ;;  %s879_s6 = scalar_lea.sflag [#allocation4], %s878_s7 }
  0x64   : > { %s3730_s24 = scalar_lea.vmem [#allocation3], %s2525_s14 }
  0x65   : > { %3352 = dma.done.wait (%p3616_p8), %s879_s6, 1024  }
  0x66   : > { %3354 = vsyncadd (%p3616_p8), %s879_s6, 4294966272  ;;  %s888_s27 = sand.u32 1, %s3591_s25   ;;  %s3737_s13 = scalar_lea.vmem [#allocation6], %s2525_s14 }
  0x67   : > { %s889_s22 = scalar_lea.sflag [#allocation7], %s888_s27 }
  0x68   : > { %3356 = dma.done.wait (%p3616_p8), %s889_s22, 2048  }
  0x69   : > { %3358 = vsyncadd (%p3616_p8), %s889_s22, 4294965248  ;;  %s3743_s30 = scalar_lea.vmem [#allocation8], %s2525_s14  ;;  %s909_s21 = scalar_lea.sflag [#allocation10], %s888_s27 }
  0x6a   : > { %s3745_s0 = scalar_lea.vmem [#allocation9], %s2525_s14 }
  0x6b   : > { %4197 = sst [smem:[#allocation35_spill]] %s3745_s0 }
  0x6c   : > { %3360 = dma.done.wait (%p3616_p8), %s909_s21, 3072  }
  0x6d   : > { %3362 = vsyncadd (%p3616_p8), %s909_s21, 4294964224  ;;  %s2529_s25 = sshll.u32 %s878_s7, 7  ;;  %s929_s11 = scalar_lea.sflag [#allocation13], %s878_s7 }
  0x6e   : > { %s3751_s15 = scalar_lea.vmem [#allocation11], %s2529_s25  ;;  %s3753_s17 = scalar_lea.vmem [#allocation12], %s2529_s25 }
  0x6f   : > { %4198 = sst [smem:[#allocation36_spill]] %s3751_s15 }
  0x70   : > { %4199 = sst [smem:[#allocation37_spill]] %s3753_s17 }
  0x71   : > { %3364 = dma.done.wait (%p3616_p8), %s929_s11, 2048  }
  0x72   : > { %3366 = vsyncadd (%p3616_p8), %s929_s11, 4294965248  ;;  %s4138_s26 = sand.u32 1, %s3377_s28   ;;  %p1061_p7 = scmp.lt.s32.totalorder %s3401_s1, 1 }
  0x73   : > { %s3763_s9 = sshll.u32 %s4138_s26, 3  ;;  %p1072_p9 = scmp.lt.s32.totalorder %s3397_s23, 1 }
  0x74   : > { %s3767_s19 = scalar_select %p1061_p7, %s3401_s1, 1 }
  0x75   : > { %s3770_s2 = scalar_select %p1072_p9, %s3397_s23, 1 }
  0x76   : > { %s2532_s20 = sshll.u32 %s3767_s19, 3  ;;  %s4201_s6 = sld [smem:[#allocation40_spill]] }
  0x77   : > { %s4202_s25 = sld [smem:[#allocation42_spill]]  ;;  %s2534_s26 = sshll.u32 %s3770_s2, 1 }
  0x78   : > { %s2536_s12 = sshll.u32 %s3767_s19, 1  ;;  %s1077_s16 = sadd.s32 %s2534_s26, %s3767_s19 }
  0x79   : > { %s4204_s4 = sld [smem:[#allocation47_spill]]  ;;  %s2535_s10 = sshll.u32 %s1077_s16, 3 }
  0x7a   : > { %s4208_s21 = sld [smem:[#allocation51_spill]]  ;;  %s1060_s1 = scalar_lea.vmem [#allocation14], %s3763_s9 }
  0x7b   : > { %s4209_s0 = sld [smem:[#allocation53_spill]]  ;;  %p2538_p8 = scmp.ne.s32.totalorder %s3397_s23, 0 }
  0x7c   : > { %s1064_s27 = scalar_lea.vmem %s4201_s6, %s2532_s20  ;;  %s4207_s6 = sld [smem:[#allocation46_spill]] }
  0x7d   : > { %s3783_s11 = scalar_lea.vmem %s4202_s25, %s2532_s20  ;;  %s4210_s16 = sld [smem:[#allocation55_spill]] }
  0x7e   : > { %4203 = sst [smem:[#allocation38_spill]] %s3783_s11 }
  0x7f   : > { %s3791_s28 = scalar_lea.vmem %s4204_s4, %s2536_s12  ;;  %s4211_s29 = sld [smem:[#allocation57_spill]] }
  0x80   : > { %4205 = sst [smem:[#allocation39_spill]] %s3791_s28  ;;  %s1089_s25 = scalar_lea.vmem %s4208_s21, %s3770_s2 }
  0x81   : > { %s1092_s18 = scalar_lea.vmem %s4209_s0, %s3770_s2  ;;  %s4212_s14 = sld [smem:[#allocation59_spill]] }
  0x82   : > { %s3800_s17 = scalar_lea.vmem %s4207_s6, %s2535_s10 }
  0x83   : > { %s1095_s5 = scalar_lea.vmem %s4210_s16, %s3770_s2  ;;  %1107 = sbr.rel (%p2538_p8) target bundleno = 138 (0x8a), region = 136 }
  0x85   : > { %s3817_s8 = scalar_lea.vmem %s4211_s29, %s2534_s26 }
  0x87   : > { %s1102_s6 = scalar_lea.vmem %s4212_s14, %s3770_s2 }
  0x88   : > { %v1108_v0 = vld [vmem:[%s1064_s27] sm:$0xff] }
  0x89   : > { %1109 = vst [vmem:[#allocation2] sm:$0xff] %v1108_v0 }
  0x8a PF: > { %v3419_v2 = vmov 128.0   ;;  %v2869_v3 = vld [vmem:[%s3730_s24 + $0x38] sm:$0xff]  ;;  %v2868_v16 = vld [vmem:[%s3730_s24 + $0x30] sm:$0xff]  ;;  %v2867_v19 = vld [vmem:[%s3730_s24 + $0x28] sm:$0xff]  ;;  %s4213_s15 = sld [smem:[#allocation45_spill]]  ;;  %vm1443_vm4 = vcmask 523264  }
  0x8b   : > { %3078 = vrcp.f32 %v3419_v2  ;;  %v2877_v4 = vld [vmem:[%s3737_s13 + $0x38] sm:$0xff]  ;;  %1215 = vmatpush.bf16.msra.mxu0 %v2869_v3  ;;  %v2876_v17 = vld [vmem:[%s3737_s13 + $0x30] sm:$0xff]  ;;  %v2875_v20 = vld [vmem:[%s3737_s13 + $0x28] sm:$0xff]  ;;  %s4214_s22 = sld [smem:[#allocation49_spill]]  ;;  %s3420_s10 = smov 64   ;;  %vm1538_vm5 = vcmask 1043456  }
  0x8c   : > { %v2885_v5 = vld [vmem:[%s3743_s30 + $0x38] sm:$0xff]  ;;  %1296 = vmatpush.bf16.msra.mxu1 %v2877_v4  ;;  %v2884_v18 = vld [vmem:[%s3743_s30 + $0x30] sm:$0xff]  ;;  %v2883_v21 = vld [vmem:[%s3743_s30 + $0x28] sm:$0xff]  ;;  %s4218_s14 = sld [smem:[#allocation43_spill]]  ;;  %vm1509_vm8 = vcmask 64512   ;;  %p2819_p10 = scmp.ne.s32.totalorder %s3397_s23, 1 }
  0x8d   : > { %1377 = vmatpush.bf16.msra.mxu2 %v2885_v5  ;;  %v2866_v22 = vld [vmem:[%s3730_s24 + $0x20] sm:$0xff]  ;;  %v2865_v25 = vld [vmem:[%s3730_s24 + $0x18] sm:$0xff]  ;;  %v2864_v28 = vld [vmem:[%s3730_s24 + $0x10] sm:$0xff]  ;;  %s4219_s26 = sld [smem:[#allocation44_spill]] }
  0x8e   : > { %v2874_v23 = vld [vmem:[%s3737_s13 + $0x20] sm:$0xff]  ;;  %v2873_v26 = vld [vmem:[%s3737_s13 + $0x18] sm:$0xff]  ;;  %v2872_v29 = vld [vmem:[%s3737_s13 + $0x10] sm:$0xff]  ;;  %s4224_s11 = sld [smem:[#allocation36_spill]] }
  0x8f   : > { %1216 = vmatpush.bf16.msra.mxu0 %v2868_v16  ;;  %v2882_v24 = vld [vmem:[%s3743_s30 + $0x20] sm:$0xff]  ;;  %v2881_v27 = vld [vmem:[%s3743_s30 + $0x18] sm:$0xff]  ;;  %v2880_v30 = vld [vmem:[%s3743_s30 + $0x10] sm:$0xff]  ;;  %s4228_s16 = sld [smem:[#allocation60_spill]] (!%p2819_p10) }
  0x90   : > { %v3825_v1 = vld [vmem:[#allocation2] sm:$0xff]  ;;  %1297 = vmatpush.bf16.msra.mxu1 %v2876_v17  ;;  %v2863_v31 = vld [vmem:[%s3730_s24 + $0x8] sm:$0xff]  ;;  %v2862_v34 = vld [vmem:[%s3730_s24] sm:$0xff]  ;;  %s4229_s28 = sld [smem:[#allocation39_spill]] (!%p2819_p10) }
  0x91   : > { %1114 = vadd.xlane.f32.xlu0 %v3825_v1  ;;  %v3079_v6 = vpop.eup %3078  ;;  %1378 = vmatpush.bf16.msra.mxu2 %v2884_v18  ;;  %v2871_v32 = vld [vmem:[%s3737_s13 + $0x8] sm:$0xff]  ;;  %v2870_v35 = vld [vmem:[%s3737_s13] sm:$0xff]  ;;  %v2889_v38 = vld [vmem:[%s4213_s15 + $0x18] sm:$0xff]  ;;  %s4215_s21 = scalar_lea.vmem %s4214_s22, %s3770_s2  ;;  %s4220_s13 = sld [smem:[#allocation41_spill]] }
  0x92   : > { %v1117_v7 = vmul.f32 128.0, %v3079_v6  ;;  %vm1121_vm0 = vweird.f32 %v3079_v6  ;;  %v2879_v33 = vld [vmem:[%s3743_s30 + $0x8] sm:$0xff]  ;;  %v2878_v36 = vld [vmem:[%s3743_s30] sm:$0xff]  ;;  %1451 = vmatpush.bf16.msra.mxu3 %v2889_v38  ;;  %v3871_v46 = vld [vmem:[%s3800_s17] sm:$0x3f]  ;;  %s4223_s17 = sld [smem:[#allocation38_spill]] }
  0x93   : > { %1217 = vmatpush.bf16.msra.mxu0 %v2867_v19  ;;  %v2888_v40 = vld [vmem:[%s4213_s15 + $0x10] sm:$0xff]  ;;  %v2887_v42 = vld [vmem:[%s4213_s15 + $0x8] sm:$0xff]  ;;  %v3874_v48 = vadd.f32 1.0, %v3871_v46  ;;  %v1144_v54 = vperm.slane %v3871_v46, 0  ;;  %v2886_v58 = vld [vmem:[%s4213_s15] sm:$0xff] }
  0x94   : > { %v1118_v8 = vsub.f32 1.0, %v1117_v7  ;;  %1298 = vmatpush.bf16.msra.mxu1 %v2875_v20  ;;  %v3073_v59 = vld [vmem:[%s4215_s21] ss:$0 sm:$0xff] }
  0x95   : > { %1379 = vmatpush.bf16.msra.mxu2 %v2883_v21  ;;  %v1142_v51 = vperm.slane %v3874_v48, 1  ;;  %v3074_v60 = vld [vmem:[%s1089_s25] ss:$0 sm:$0xff] }
  0x96   : > { %v1119_v9 = vmul.f32 %v3079_v6, %v1118_v8  ;;  %1452 = vmatpush.bf16.msra.mxu3 %v2888_v40  ;;  %v3075_v4 = vld [vmem:[%s1092_s18] ss:$0 sm:$0xff] }
  0x97   : > { %1218 = vmatpush.bf16.msra.mxu0 %v2866_v22  ;;  %v1415_v18 = vld [vmem:[%s4218_s14] sm:$0xff]  ;;  %s4221_s30 = scalar_lea.vmem %s4220_s13, %s3767_s19  ;;  %s4222_s19 = sld [smem:[#allocation35_spill]] }
  0x98   : > { %v1120_v10 = vadd.f32 %v3079_v6, %v1119_v9  ;;  %1299 = vmatpush.bf16.msra.mxu1 %v2874_v23  ;;  %v1416_v19 = vld [vmem:[%s4219_s26] sm:$0xff] }
  0x99   : > { %1380 = vmatpush.bf16.msra.mxu2 %v2882_v24 }
  0x9a   : > { %v3831_v11 = vsel %vm1121_vm0, %v3079_v6, %v1120_v10  ;;  %1453 = vmatpush.bf16.msra.mxu3 %v2887_v42 }
  0x9b   : > { %1219 = vmatpush.bf16.msra.mxu0 %v2865_v25 }
  0x9c   : > { %1300 = vmatpush.bf16.msra.mxu1 %v2873_v26 }
  0x9d   : > { %1381 = vmatpush.bf16.msra.mxu2 %v2881_v27 }
  0x9e   : > { %1454 = vmatpush.bf16.msra.mxu3 %v2886_v58 }
  0x9f   : > { %1220 = vmatpush.bf16.msra.mxu0 %v2864_v28 }
  0xa0   : > { %1301 = vmatpush.bf16.msra.mxu1 %v2872_v29 }
  0xa1   : > { %1382 = vmatpush.bf16.msra.mxu2 %v2880_v30 }
  0xa2   : > { %1471 = vmatpush.bf16.msrb.mxu3 %v2889_v38 }
  0xa3   : > { %1221 = vmatpush.bf16.msra.mxu0 %v2863_v31  ;;  %v3421_v31 = vmov 0  }
  0xa4   : > { %1302 = vmatpush.bf16.msra.mxu1 %v2871_v32  ;;  %3072 = vset.pattern.permute.xlu0 %v3421_v31  ;;  %v1111_v32 = vld [vmem:[%s4221_s30] sm:$0x1] }
  0xa5   : > { %1383 = vmatpush.bf16.msra.mxu2 %v2879_v33  ;;  %vm1504_vm6 = vcmp.gt.f32.partialorder %v1111_v32, 0.5  ;;  %v2890_v32 = vld [vmem:[%s4222_s19] sm:$0xff] }
  0xa6   : > { %1472 = vmatpush.bf16.msrb.mxu3 %v2888_v40  ;;  %v1505_v33 = vsel %vm1504_vm6, 1, %v3421_v31  ;;  %v2891_v31 = vld [vmem:[%s4222_s19 + $0x8] sm:$0xff] }
  0xa7   : > { %1222 = vmatpush.bf16.msra.mxu0 %v2862_v34  ;;  %v1506_v34 = vperm.slane %v1505_v33, 0 }
  0xa8   : > { %1303 = vmatpush.bf16.msra.mxu1 %v2870_v35 }
  0xa9   : > { %1384 = vmatpush.bf16.msra.mxu2 %v2878_v36  ;;  %vm1507_vm7 = vcmp.eq.s32.totalorder %v1506_v34, 1 }
  0xaa   : > { %1473 = vmatpush.bf16.msrb.mxu3 %v2887_v42 }
  0xae   : > { %1474 = vmatpush.bf16.msrb.mxu3 %v2886_v58 }
 0x104   : > { %v1115_v12 = vpop.xlane.xlu0 %1114 }
 0x105   : > { %v1123_v13 = vmul.f32 %v3831_v11, %v1115_v12 }
 0x107   : > { %v3835_v14 = vsub.f32 %v3825_v1, %v1123_v13 }
 0x109   : > { %v1125_v15 = vmul.f32 %v3835_v14, %v3835_v14 }
 0x10b   : > { %1126 = vadd.xlane.f32.xlu0 %v1125_v15 }
 0x17e   : > { %v1127_v37 = vpop.xlane.xlu0 %1126 }
 0x17f   : > { %v1128_v39 = vmul.f32 %v1127_v37, %v3831_v11 }
 0x181   : > { %v1129_v41 = vadd.f32 1e-06, %v1128_v39 }
 0x183   : > { %3080 = vrsqrt.f32 %v1129_v41  ;;  %vm1136_vm2 = vweird.f32 %v1129_v41 }
 0x189   : > { %v3081_v43 = vpop.eup %3080 }
 0x18a   : > { %v1131_v44 = vmul.f32 %v3081_v43, %v1129_v41  ;;  %vm1137_vm1 = vweird.f32 %v3081_v43 }
 0x18b   : > { %vm1138_vm3 = vmor %vm1136_vm2, %vm1137_vm1 }
 0x18c   : > { %v1132_v45 = vmul.f32 %v3081_v43, %v1131_v44 }
 0x18e   : > { %v1133_v47 = vmul.f32 0.5, %v1132_v45 }
 0x190   : > { %v1134_v49 = vsub.f32 1.5, %v1133_v47 }
 0x192   : > { %v1135_v50 = vmul.f32 %v3081_v43, %v1134_v49 }
 0x194   : > { %v1139_v52 = vsel %vm1138_vm3, %v3081_v43, %v1135_v50 }
 0x195   : > { %v1140_v53 = vmul.f32 %v1139_v52, %v3835_v14 }
 0x197   : > { %v1143_v55 = vmul.f32 %v1142_v51, %v1140_v53 }
 0x199   : > { %v1145_v56 = vadd.f32 %v1144_v54, %v1143_v55 }
 0x19b   : > { %v1146_v57 = vpack.c.bf16 %v1145_v56, %v1145_v56 }
 0x19d   : > { %1223 = vmatmul.bf16.vlgmr.msra.gmra.mxu0 %v1146_v57  ;;  %1304 = vmatmul.bf16.vlgmr.msra.gmra.mxu1 %v1146_v57 }
 0x19e   : > { %1385 = vmatmul.bf16.vlgmr.msra.gmra.mxu2 %v1146_v57 }
 0x21a   : > { %v1224_v61 = vpop.f32.mrf.mxu0  ;;  %v1305_v62 = vpop.f32.mrf.mxu1 }
 0x21b   : > { %v1225_v63 = vadd.f32 %v3073_v59, %v1224_v61  ;;  %v1306_v0 = vadd.f32 %v3074_v60, %v1305_v62 }
 0x21d   : > { %v1418_v2 = vpack.c.bf16 %v1225_v63, %v1225_v63  ;;  %v1463_v3 = vpack.c.bf16 %v1306_v0, %v1306_v0  ;;  %v1462_v21 = vmul.f32 %v1415_v18, %v1306_v0  ;;  %v1417_v26 = vmul.f32 %v1415_v18, %v1225_v63 }
 0x21f   : > { %1560 = vrot.lane.b32.xlu1 %v1463_v3, %s3420_s10  ;;  %2651 = vmatmul.msk.bf16.vlgmr.msra.gmra.mxu3 %vm1443_vm4, %v1418_v2 }
 0x221   : > { %v1386_v5 = vpop.f32.mrf.mxu2 }
 0x222   : > { %v1387_v6 = vadd.f32 %v3075_v4, %v1386_v5  ;;  %v1226_v7 = vpop.f32.mrf.mxu0  ;;  %v1307_v8 = vpop.f32.mrf.mxu1 }
 0x224   : > { %v1390_v9 = vpack.c.bf16 %v1387_v6, %v1387_v6 }
 0x226   : > { %v1540_v10 = vsel %vm1538_vm5, %v1390_v9, 0  ;;  %v1609_v45 = vunpack.c.l.b16 %v1390_v9 }
 0x227   : > { %1549 = vmatpush.bf16.msrb.mxu1 %v1540_v10  ;;  %1557 = vrot.lane.b32.xlu1 %v1418_v2, %s3420_s10 }
 0x228   : > { %v1610_v47 = vpack.c.b16 %v1609_v45, %v1609_v45 }
 0x229   : > { %v1388_v12 = vpop.f32.mrf.mxu2 }
 0x22a   : > { %v2897_v12 = vld [vmem:[%s4222_s19 + $0x38] sm:$0xff] }
 0x22f   : > { %2652 = vmatmul.msk.bf16.vlgmr.msrb.gmra.mxu3 %vm1443_vm4, %v1463_v3 }
 0x291   : > { %v1561_v13 = vpop.permute.xlu1 %1560 }
 0x292   : > { %v1566_v14 = vsel %vm1443_vm4, %v1561_v13, 0  ;;  %v2896_v13 = vld [vmem:[%s4222_s19 + $0x30] sm:$0xff] }
 0x293   : > { %1575 = vmatpush.bf16.xpose.msrb.mxu2 %v1566_v14  ;;  %v2895_v14 = vld [vmem:[%s4222_s19 + $0x28] sm:$0xff] }
 0x299   : > { %v1558_v15 = vpop.permute.xlu1 %1557 }
 0x29a   : > { %2655 = vmatmul.msk.bf16.vlgmr.msrb.gmra.mxu2 %vm1443_vm4, %v1558_v15 }
 0x2a2   : > { %v1456_v16 = vpop.f32.mrf.mxu3 }
 0x2a3   : > { %v1460_v24 = vmul.f32 %v1456_v16, %v1416_v19 }
 0x2a5   : > { %v1461_v29 = vadd.f32 %v1460_v24, %v1417_v26 }
 0x2a7   : > { %v1482_v30 = vpack.c.bf16 %v1461_v29, %v1461_v29  ;;  %v2893_v29 = vld [vmem:[%s4222_s19 + $0x18] sm:$0xff] }
 0x2a8   : > { %1704 = vmatpush.bf16.msra.mxu1 %v2893_v29  ;;  %v2711_v29 = vld [vmem:[%s4224_s11 + $0x28] sm:$0xf0] }
 0x2aa   : > { %v1458_v17 = vpop.f32.mrf.mxu3 }
 0x2b2   : > { %v1476_v20 = vpop.f32.mrf.mxu3 }
 0x2b3   : > { %v1480_v22 = vmul.f32 %v1476_v20, %v1416_v19 }
 0x2b5   : > { %v1481_v23 = vadd.f32 %v1480_v22, %v1462_v21 }
 0x2b7   : > { %v1483_v25 = vpack.c.bf16 %v1481_v23, %v1481_v23 }
 0x2b9   : > { %v1488_v27 = vsel %vm1443_vm4, %v1483_v25, 0 }
 0x2ba   : > { %v1478_v28 = vpop.f32.mrf.mxu3  ;;  %1497 = vmatpush.bf16.xpose.msrb.mxu0 %v1488_v27 }
 0x2bb   : > { %v2894_v28 = vld [vmem:[%s4222_s19 + $0x20] sm:$0xff] }
 0x2c1   : > { %2653 = vmatmul.msk.bf16.vlgmr.msrb.gmra.mxu0 %vm1443_vm4, %v1482_v30  ;;  %v2892_v30 = vld [vmem:[%s4222_s19 + $0x10] sm:$0xff] }
 0x2c2   : > { %1664 = vmatpush.bf16.msra.mxu0 %v2897_v12  ;;  %1705 = vmatpush.bf16.msra.mxu1 %v2892_v30 }
 0x2c6   : > { %1665 = vmatpush.bf16.msra.mxu0 %v2896_v13  ;;  %1706 = vmatpush.bf16.msra.mxu1 %v2891_v31  ;;  %v2725_v13 = vld [vmem:[%s4224_s11 + $0x40] sm:$0xf]  ;;  %v2701_v31 = vld [vmem:[%s4224_s11 + $0x10] sm:$0xf] }
 0x2ca   : > { %1666 = vmatpush.bf16.msra.mxu0 %v2895_v14  ;;  %1707 = vmatpush.bf16.msra.mxu1 %v2890_v32  ;;  %v2907_v14 = vld [vmem:[%s4224_s11 + $0x44] sm:$0xf0]  ;;  %v2901_v32 = vld [vmem:[%s4224_s11 + $0x14] sm:$0xf0] }
 0x2ce   : > { %1667 = vmatpush.bf16.msra.mxu0 %v2894_v28 }
 0x31d   : > { %v1577_v35 = vpop.f32.mrf.mxu2 }
 0x31e   : > { %v1581_v36 = vmul.f32 0.125, %v1577_v35  ;;  %v1112_v35 = vld [vmem:[%s4223_s17] sm:$0xff] }
 0x320   : > { %v1582_v37 = vsel %vm1507_vm7, %v1581_v36, -1e+30 }
 0x321   : > { %v1583_v38 = vsel %vm1509_vm8, %v1582_v37, -inf }
 0x322   : > { %1584 = vmax.xlane.f32.xlu2 %v1583_v38 }
 0x325   : > { %v1579_v39 = vpop.f32.mrf.mxu2 }
 0x33e   : > { %v1499_v40 = vpop.f32.mrf.mxu0 }
 0x33f   : > { %v1503_v41 = vmul.f32 0.125, %v1499_v40 }
 0x341   : > { %v1508_v42 = vsel %vm1507_vm7, %v1503_v41, -1e+30 }
 0x342   : > { %v1510_v43 = vsel %vm1509_vm8, %v1508_v42, -inf }
 0x343   : > { %1511 = vmax.xlane.f32.xlu2 %v1510_v43 }
 0x346   : > { %v1501_v44 = vpop.f32.mrf.mxu0 }
 0x35b   : > { %1611 = vrot.lane.b32.xlu2 %v1610_v47, %s3420_s10  ;;  %v1724_v47 = vperm.slane %v3871_v46, 2 }
 0x395   : > { %v1585_v49 = vpop.xlane.xlu2 %1584 }
 0x396   : > { %v1586_v50 = vsub.f32 %v1582_v37, %v1585_v49 }
 0x398   : > { %v1587_v51 = vmul.f32 1.442695, %v1586_v50 }
 0x39a   : > { %3082 = vpow2.f32 %v1587_v51 }
 0x3a0   : > { %v3083_v52 = vpop.eup %3082 }
 0x3a1   : > { %v1589_v53 = vsel %vm1509_vm8, %v3083_v52, 0.0 }
 0x3a2   : > { %1590 = vadd.xlane.f32.xlu0 %v1589_v53 }
 0x3b6   : > { %v1512_v54 = vpop.xlane.xlu2 %1511  ;;  %1720 = vperm.xlu0 %3072, %v1112_v35   ;;  %v2703_v35 = vld [vmem:[%s4224_s11 + $0x18] sm:$0xf0] }
 0x3b7   : > { %v1513_v55 = vsub.f32 %v1508_v42, %v1512_v54  ;;  %v3076_v42 = vld [vmem:[%s1095_s5] ss:$0 sm:$0xff]  ;;  %v2749_v54 = vld [vmem:[%s4224_s11 + $0x70] sm:$0xf]  ;;  %s4226_s5 = sld [smem:[#allocation37_spill]] }
 0x3b9   : > { %v1514_v56 = vmul.f32 1.442695, %v1513_v55  ;;  %v2913_v55 = vld [vmem:[%s4224_s11 + $0x74] sm:$0xf0] }
 0x3bb   : > { %3084 = vpow2.f32 %v1514_v56  ;;  %v2912_v56 = vld [vmem:[%s4224_s11 + $0x74] sm:$0xf] }
 0x3be   : > { %v1612_v57 = vpop.permute.xlu2 %1611 }
 0x3bf   : > { %v1617_v58 = vsel %vm1538_vm5, %v1612_v57, 0  ;;  %v2750_v57 = vor.u32 %v2913_v55, %v2749_v54 }
 0x3c0   : > { %1626 = vmatpush.bf16.msra.mxu3 %v1617_v58  ;;  %v2751_v58 = vld [vmem:[%s4224_s11 + $0x78] sm:$0xf0] }
 0x3c1   : > { %v3085_v59 = vpop.eup %3084  ;;  %1854 = vmatpush.bf16.msra.mxu2 %v2750_v57  ;;  %v1747_v57 = vperm.slane %v3874_v48, 4  ;;  %v2919_v48 = vld [vmem:[%s4226_s5 + $0x28] sm:$0xff] }
 0x3c2   : > { %v1516_v60 = vsel %vm1509_vm8, %v3085_v59, 0.0 }
 0x3c3   : > { %1517 = vadd.xlane.f32.xlu1 %v1516_v60 }
 0x415   : > { %v1591_v61 = vpop.xlane.xlu0 %1590 }
 0x416   : > { %3086 = vrcp.f32 %v1591_v61  ;;  %v1603_v2 = vand.u32 2147483648, %v1591_v61  ;;  %v1601_v4 = vand.u32 2147483647, %v1591_v61  ;;  %vm1597_vm10 = vweird.f32 %v1591_v61 }
 0x418   : > { %v1604_v6 = vor.u32 1.1754944e-38, %v1603_v2  ;;  %vm1602_vm12 = vcmp.eq.f32.partialorder %v1601_v4, 8.507059e+37  ;;  %v2910_v2 = vld [vmem:[%s4224_s11 + $0x64] sm:$0xf]  ;;  %v2743_v4 = vld [vmem:[%s4224_s11 + $0x68] sm:$0xf0] }
 0x41c   : > { %v3087_v62 = vpop.eup %3086 }
 0x41d   : > { %v1593_v63 = vmul.f32 %v3087_v62, %v1591_v61  ;;  %vm1598_vm9 = vweird.f32 %v3087_v62 }
 0x41e   : > { %vm1599_vm11 = vmor %vm1597_vm10, %vm1598_vm9 }
 0x41f   : > { %v1594_v0 = vsub.f32 1.0, %v1593_v63  ;;  %v2741_v63 = vld [vmem:[%s4224_s11 + $0x60] sm:$0xf] }
 0x421   : > { %v1595_v3 = vmul.f32 %v3087_v62, %v1594_v0  ;;  %v2911_v0 = vld [vmem:[%s4224_s11 + $0x64] sm:$0xf0] }
 0x423   : > { %v1596_v5 = vadd.f32 %v3087_v62, %v1595_v3  ;;  %v2742_v3 = vor.u32 %v2911_v0, %v2741_v63  ;;  %v2920_v0 = vld [vmem:[%s4226_s5 + $0x30] sm:$0xff] }
 0x425   : > { %v1600_v7 = vsel %vm1599_vm11, %v3087_v62, %v1596_v5  ;;  %v2746_v5 = vor.u32 %v2910_v2, %v2743_v4  ;;  %1855 = vmatpush.bf16.msra.mxu2 %v2742_v3  ;;  %v2928_v2 = vld [vmem:[%s4226_s5 + $0x70] sm:$0xff]  ;;  %v2927_v3 = vld [vmem:[%s4226_s5 + $0x68] sm:$0xff]  ;;  %v2926_v4 = vld [vmem:[%s4226_s5 + $0x60] sm:$0xff] }
 0x426   : > { %v1605_v8 = vsel %vm1602_vm12, %v1604_v6, %v1600_v7  ;;  %v2733_v6 = vld [vmem:[%s4224_s11 + $0x50] sm:$0xf]  ;;  %v2909_v7 = vld [vmem:[%s4224_s11 + $0x54] sm:$0xf0] }
 0x427   : > { %v1606_v9 = vmul.f32 %v3083_v52, %v1605_v8  ;;  %v2908_v8 = vld [vmem:[%s4224_s11 + $0x54] sm:$0xf] }
 0x428   : > { %v1721_v45 = vpop.permute.xlu0 %1720 }
 0x429   : > { %v1607_v10 = vpack.c.bf16 %v1606_v9, %v1606_v9  ;;  %v2734_v9 = vor.u32 %v2909_v7, %v2733_v6  ;;  %v2925_v6 = vld [vmem:[%s4226_s5 + $0x58] sm:$0xff]  ;;  %v2916_v7 = vld [vmem:[%s4226_s5 + $0x10] sm:$0xff] }
 0x42b   : > { %2656 = vmatmul.msk.bf16.vlgmr.msra.gmra.mxu3 %vm1509_vm8, %v1607_v10  ;;  %v2735_v10 = vld [vmem:[%s4224_s11 + $0x58] sm:$0xf0]  ;;  %1856 = vmatpush.bf16.msra.mxu2 %v2734_v9  ;;  %v2915_v9 = vld [vmem:[%s4226_s5 + $0x8] sm:$0xff] }
 0x42c   : > { %v2738_v12 = vor.u32 %v2908_v8, %v2735_v10  ;;  %v2924_v8 = vld [vmem:[%s4226_s5 + $0x50] sm:$0xff]  ;;  %v2923_v10 = vld [vmem:[%s4226_s5 + $0x48] sm:$0xff] }
 0x436   : > { %v1518_v15 = vpop.xlane.xlu1 %1517 }
 0x437   : > { %3088 = vrcp.f32 %v1518_v15  ;;  %v1530_v19 = vand.u32 2147483648, %v1518_v15  ;;  %v1528_v21 = vand.u32 2147483647, %v1518_v15  ;;  %vm1524_vm14 = vweird.f32 %v1518_v15 }
 0x439   : > { %v1531_v23 = vor.u32 1.1754944e-38, %v1530_v19  ;;  %vm1529_vm0 = vcmp.eq.f32.partialorder %v1528_v21, 8.507059e+37  ;;  %v2717_v19 = vld [vmem:[%s4224_s11 + $0x30] sm:$0xf]  ;;  %v2904_v21 = vld [vmem:[%s4224_s11 + $0x34] sm:$0xf] }
 0x43d   : > { %v3089_v16 = vpop.eup %3088 }
 0x43e   : > { %v1520_v17 = vmul.f32 %v3089_v16, %v1518_v15  ;;  %vm1525_vm13 = vweird.f32 %v3089_v16  ;;  %v2906_v15 = vld [vmem:[%s4224_s11 + $0x44] sm:$0xf] }
 0x43f   : > { %vm1526_vm15 = vmor %vm1524_vm14, %vm1525_vm13 }
 0x440   : > { %v1521_v18 = vsub.f32 1.0, %v1520_v17  ;;  %v2727_v17 = vld [vmem:[%s4224_s11 + $0x48] sm:$0xf0] }
 0x442   : > { %v1522_v20 = vmul.f32 %v3089_v16, %v1521_v18  ;;  %v2730_v18 = vor.u32 %v2906_v15, %v2727_v17 }
 0x444   : > { %v1523_v22 = vadd.f32 %v3089_v16, %v1522_v20  ;;  %v2905_v20 = vld [vmem:[%s4224_s11 + $0x34] sm:$0xf0] }
 0x446   : > { %v1527_v24 = vsel %vm1526_vm15, %v3089_v16, %v1523_v22  ;;  %v2726_v16 = vor.u32 %v2907_v14, %v2725_v13  ;;  %v2718_v22 = vor.u32 %v2905_v20, %v2717_v19  ;;  %v2922_v13 = vld [vmem:[%s4226_s5 + $0x40] sm:$0xff] }
 0x447   : > { %v1532_v25 = vsel %vm1529_vm0, %v1531_v23, %v1527_v24  ;;  %v2719_v23 = vld [vmem:[%s4224_s11 + $0x38] sm:$0xf0]  ;;  %v1768_v14 = vld [vmem:[%s3817_s8] sm:$0x3] }
 0x448   : > { %v1533_v26 = vmul.f32 %v3085_v59, %v1532_v25  ;;  %v2754_v59 = vor.u32 %v2912_v56, %v2751_v58  ;;  %1857 = vmatpush.bf16.msra.mxu2 %v2726_v16  ;;  %v2722_v24 = vor.u32 %v2904_v21, %v2719_v23  ;;  %v2709_v25 = vld [vmem:[%s4224_s11 + $0x20] sm:$0xf]  ;;  %v1770_v15 = vperm.slane %v1768_v14, 0 }
 0x449   : > { %v1771_v16 = vperm.slane %v1768_v14, 1 }
 0x44a   : > { %v1534_v27 = vpack.c.bf16 %v1533_v26, %v1533_v26  ;;  %1867 = vmatpush.bf16.msrb.mxu3 %v2754_v59  ;;  %v2903_v26 = vld [vmem:[%s4224_s11 + $0x24] sm:$0xf0] }
 0x44b   : > { %v2710_v28 = vor.u32 %v2903_v26, %v2709_v25 }
 0x44c   : > { %2654 = vmatmul.msk.bf16.vlgmr.msrb.gmra.mxu1 %vm1509_vm8, %v1534_v27  ;;  %1858 = vmatpush.bf16.msra.mxu2 %v2718_v22  ;;  %v2902_v27 = vld [vmem:[%s4224_s11 + $0x24] sm:$0xf] }
 0x44d   : > { %v2714_v30 = vor.u32 %v2902_v27, %v2711_v29 }
 0x44e   : > { %1868 = vmatpush.bf16.msrb.mxu3 %v2746_v5  ;;  %v2917_v5 = vld [vmem:[%s4226_s5 + $0x18] sm:$0xff] }
 0x450   : > { %1859 = vmatpush.bf16.msra.mxu2 %v2710_v28 }
 0x452   : > { %1869 = vmatpush.bf16.msrb.mxu3 %v2738_v12  ;;  %v2914_v12 = vld [vmem:[%s4226_s5] sm:$0xff] }
 0x456   : > { %1870 = vmatpush.bf16.msrb.mxu3 %v2730_v18 }
 0x45a   : > { %1871 = vmatpush.bf16.msrb.mxu3 %v2722_v24 }
 0x45e   : > { %1872 = vmatpush.bf16.msrb.mxu3 %v2714_v30 }
 0x4ae   : > { %v1628_v33 = vpop.f32.mrf.mxu3 }
 0x4af   : > { %v1632_v34 = vpack.c.bf16 %v1628_v33, %v1628_v33  ;;  %v2900_v33 = vld [vmem:[%s4224_s11 + $0x14] sm:$0xf] }
 0x4b1   : > { %2673 = vmatmul.msk.bf16.vlgmr.msra.gmra.mxu0 %vm1443_vm4, %v1632_v34  ;;  %v2702_v34 = vor.u32 %v2901_v32, %v2701_v31 }
 0x4b3   : > { %1860 = vmatpush.bf16.msra.mxu2 %v2702_v34 }
 0x4b6   : > { %v1630_v36 = vpop.f32.mrf.mxu3 }
 0x4b7   : > { %v2693_v36 = vld [vmem:[%s4224_s11] sm:$0xf] }
 0x4c9   : > { %v1551_v37 = vpop.f32.mrf.mxu1 }
 0x4ca   : > { %v1555_v38 = vpack.c.bf16 %v1551_v37, %v1551_v37  ;;  %v2899_v37 = vld [vmem:[%s4224_s11 + $0x4] sm:$0xf0] }
 0x4cc   : > { %2690 = vmatmul.msk.bf16.vlgmr.msra.gmra.mxu1 %vm1443_vm4, %v1555_v38  ;;  %v2706_v38 = vor.u32 %v2900_v33, %v2703_v35 }
 0x4ce   : > { %1873 = vmatpush.bf16.msrb.mxu3 %v2706_v38 }
 0x4d1   : > { %v1553_v39 = vpop.f32.mrf.mxu1 }
 0x4d2   : > { %v2898_v39 = vld [vmem:[%s4224_s11 + $0x4] sm:$0xf] }
 0x52e   : > { %v1669_v40 = vpop.f32.mrf.mxu0 }
 0x536   : > { %v1671_v41 = vpop.f32.mrf.mxu0 }
 0x537   : > { %v2694_v41 = vor.u32 %v2899_v37, %v2693_v36 }
 0x539   : > { %1861 = vmatpush.bf16.msra.mxu2 %v2694_v41 }
 0x549   : > { %v1709_v43 = vpop.f32.mrf.mxu1 }
 0x54a   : > { %v1710_v44 = vadd.f32 %v1709_v43, %v1669_v40  ;;  %v2695_v40 = vld [vmem:[%s4224_s11 + $0x8] sm:$0xf0]  ;;  %v2921_v43 = vld [vmem:[%s4226_s5 + $0x38] sm:$0xff]  ;;  %s4230_s11 = sld [smem:[#allocation61_spill]] (!%p2819_p10) }
 0x54b   : > { %2032 = vmatpush.bf16.msrb.mxu0 %v2921_v43  ;;  %v3077_v43 = vld [vmem:[%s1102_s6] ss:$0 sm:$0xff] }
 0x54c   : > { %v1717_v49 = vadd.f32 %v3076_v42, %v1710_v44  ;;  %v2698_v42 = vor.u32 %v2898_v39, %v2695_v40  ;;  %v2929_v44 = vld [vmem:[%s4226_s5 + $0x78] sm:$0xff] }
 0x54d   : > { %2045 = vmatpush.bf16.msrb.mxu1 %v2929_v44 }
 0x54e   : > { %v1723_v50 = vmul.f32 %v1721_v45, %v1717_v49  ;;  %1874 = vmatpush.bf16.msrb.mxu3 %v2698_v42 }
 0x54f   : > { %2033 = vmatpush.bf16.msrb.mxu0 %v2920_v0 }
 0x550   : > { %v1725_v51 = vmul.f32 %v1724_v47, %v1723_v50 }
 0x551   : > { %v1711_v52 = vpop.f32.mrf.mxu1  ;;  %2046 = vmatpush.bf16.msrb.mxu1 %v2928_v2 }
 0x552   : > { %v3943_v53 = vadd.f32 %v1725_v51, %v3825_v1 }
 0x553   : > { %2034 = vmatpush.bf16.msrb.mxu0 %v2919_v48 }
 0x554   : > { %1727 = vadd.xlane.f32.xlu2 %v3943_v53 }
 0x555   : > { %2047 = vmatpush.bf16.msrb.mxu1 %v2927_v3 }
 0x559   : > { %2048 = vmatpush.bf16.msrb.mxu1 %v2926_v4 }
 0x55d   : > { %2049 = vmatpush.bf16.msrb.mxu1 %v2925_v6 }
 0x561   : > { %2050 = vmatpush.bf16.msrb.mxu1 %v2924_v8 }
 0x565   : > { %2051 = vmatpush.bf16.msrb.mxu1 %v2923_v10 }
 0x569   : > { %2052 = vmatpush.bf16.msrb.mxu1 %v2922_v13 }
 0x5c7   : > { %v1728_v60 = vpop.xlane.xlu2 %1727 }
 0x5c8   : > { %v1729_v1 = vmul.f32 %v1728_v60, %v3831_v11  ;;  %v1749_v60 = vperm.slane %v3871_v46, 3 }
 0x5ca   : > { %v3952_v61 = vsub.f32 %v3943_v53, %v1729_v1 }
 0x5cc   : > { %v1731_v62 = vmul.f32 %v3952_v61, %v3952_v61 }
 0x5ce   : > { %1732 = vadd.xlane.f32.xlu1 %v1731_v62 }
 0x641   : > { %v1733_v45 = vpop.xlane.xlu1 %1732 }
 0x642   : > { %v1734_v47 = vmul.f32 %v1733_v45, %v3831_v11 }
 0x644   : > { %v1735_v49 = vadd.f32 1e-06, %v1734_v47 }
 0x646   : > { %3090 = vrsqrt.f32 %v1735_v49  ;;  %vm1742_vm2 = vweird.f32 %v1735_v49 }
 0x64c   : > { %v3091_v50 = vpop.eup %3090 }
 0x64d   : > { %v1737_v51 = vmul.f32 %v3091_v50, %v1735_v49  ;;  %vm1743_vm1 = vweird.f32 %v3091_v50  ;;  %v2058_v49 = vperm.slane %v3871_v46, 5 }
 0x64e   : > { %vm1744_vm3 = vmor %vm1742_vm2, %vm1743_vm1 }
 0x64f   : > { %v1738_v52 = vmul.f32 %v3091_v50, %v1737_v51 }
 0x651   : > { %v1739_v54 = vmul.f32 0.5, %v1738_v52 }
 0x653   : > { %v1740_v55 = vsub.f32 1.5, %v1739_v54 }
 0x655   : > { %v1741_v56 = vmul.f32 %v3091_v50, %v1740_v55 }
 0x657   : > { %v1745_v58 = vsel %vm1744_vm3, %v3091_v50, %v1741_v56 }
 0x658   : > { %v1746_v59 = vmul.f32 %v1745_v58, %v3952_v61  ;;  %v2918_v61 = vld [vmem:[%s4226_s5 + $0x20] sm:$0xff] }
 0x659   : > { %2035 = vmatpush.bf16.msrb.mxu0 %v2918_v61 }
 0x65a   : > { %v1748_v1 = vmul.f32 %v1747_v57, %v1746_v59 }
 0x65c   : > { %v1750_v62 = vadd.f32 %v1749_v60, %v1748_v1 }
 0x65d   : > { %2036 = vmatpush.bf16.msrb.mxu0 %v2917_v5 }
 0x65e   : > { %v1751_v63 = vpack.c.bf16 %v1750_v62, %v1750_v62 }
 0x660   : > { %1862 = vmatmul.bf16.vlgmr.msra.gmra.mxu2 %v1751_v63  ;;  %1875 = vmatmul.bf16.vlgmr.msrb.gmra.mxu3 %v1751_v63 }
 0x661   : > { %2037 = vmatpush.bf16.msrb.mxu0 %v2916_v7 }
 0x665   : > { %2038 = vmatpush.bf16.msrb.mxu0 %v2915_v9 }
 0x669   : > { %2039 = vmatpush.bf16.msrb.mxu0 %v2914_v12 }
 0x6e3   : > { %v1863_v17 = vpop.f32.mrf.mxu2  ;;  %v1876_v18 = vpop.f32.mrf.mxu3 }
 0x6e4   : > { %v1864_v19 = vadd.f32 %v1863_v17, %v1770_v15  ;;  %v1877_v20 = vadd.f32 %v1876_v18, %v1771_v16 }
 0x6e6   : > { %v1880_v21 = vmul.f32 %v1864_v19, %v1864_v19  ;;  %v1881_v22 = vmul.f32 %v1877_v20, %v1877_v20 }
 0x6e8   : > { %v1882_v23 = vmul.f32 %v1880_v21, %v1864_v19  ;;  %v1883_v24 = vmul.f32 %v1881_v22, %v1877_v20 }
 0x6ea   : > { %v1884_v25 = vmul.f32 0.044715, %v1882_v23  ;;  %v1885_v26 = vmul.f32 0.044715, %v1883_v24 }
 0x6eb   : > { %v1865_v27 = vpop.f32.mrf.mxu2  ;;  %v1878_v28 = vpop.f32.mrf.mxu3 }
 0x6ec   : > { %v1886_v29 = vadd.f32 %v1884_v25, %v1864_v19  ;;  %v1887_v30 = vadd.f32 %v1885_v26, %v1877_v20 }
 0x6ee   : > { %v1888_v31 = vmul.f32 0.7978846, %v1886_v29  ;;  %v1889_v32 = vmul.f32 0.7978846, %v1887_v30 }
 0x6f0   : > { %3092 = vtanh.f32 %v1888_v31 }
 0x6f1   : > { %3094 = vtanh.f32 %v1889_v32 }
 0x6f6   : > { %v3093_v33 = vpop.eup %3092 }
 0x6f7   : > { %v3095_v34 = vpop.eup %3094  ;;  %v1892_v35 = vadd.f32 1.0, %v3093_v33 }
 0x6f8   : > { %v1893_v36 = vadd.f32 1.0, %v3095_v34 }
 0x6f9   : > { %v1894_v37 = vmul.f32 0.5, %v1892_v35 }
 0x6fa   : > { %v1895_v38 = vmul.f32 0.5, %v1893_v36 }
 0x6fb   : > { %v1896_v39 = vmul.f32 %v1894_v37, %v1864_v19 }
 0x6fc   : > { %v1897_v40 = vmul.f32 %v1895_v38, %v1877_v20 }
 0x6fd   : > { %v1898_v41 = vpack.c.bf16 %v1896_v39, %v1896_v39 }
 0x6fe   : > { %v1899_v42 = vpack.c.bf16 %v1897_v40, %v1897_v40 }
 0x6ff   : > { %2040 = vmatmul.bf16.vlgmr.msrb.gmra.mxu0 %v1898_v41 }
 0x700   : > { %2053 = vmatmul.bf16.vlgmr.msrb.gmra.mxu1 %v1899_v42 }
 0x77c   : > { %v2041_v44 = vpop.f32.mrf.mxu0 }
 0x77d   : > { %v2042_v45 = vadd.f32 %v3077_v43, %v2041_v44  ;;  %v2054_v47 = vpop.f32.mrf.mxu1 }
 0x77f   : > { %v2055_v50 = vadd.f32 %v2054_v47, %v2042_v45 }
 0x781   : > { %v2059_v51 = vmul.f32 %v2058_v49, %v2055_v50  ;;  %2065 = sbr.rel (%p2819_p10) target bundleno = 2328 (0x918), region = 140 }
 0x783   : > { %v2060_v52 = vadd.f32 %v2059_v51, %v3943_v53 }
 0x784   : > { %v2043_v54 = vpop.f32.mrf.mxu0 }
 0x785   : > { %2061 = vst [vmem:[#allocation2] sm:$0xff] %v2060_v52  ;;  %v2056_v55 = vpop.f32.mrf.mxu1 }
 0x786   : > { %2067 = vadd.xlane.f32.xlu0 %v2060_v52  ;;  %v2937_v46 = vld [vmem:[%s4228_s16 + $0x38] sm:$0xff]  ;;  %v2936_v53 = vld [vmem:[%s4228_s16 + $0x30] sm:$0xff]  ;;  %v2935_v60 = vld [vmem:[%s4228_s16 + $0x28] sm:$0xff]  ;;  %vm2174_vm7 = vcmask 130048  }
 0x787   : > { %2161 = vmatpush.bf16.msra.mxu0 %v2937_v46  ;;  %v2934_v1 = vld [vmem:[%s4228_s16 + $0x20] sm:$0xff]  ;;  %v2933_v62 = vld [vmem:[%s4228_s16 + $0x18] sm:$0xff]  ;;  %v2932_v63 = vld [vmem:[%s4228_s16 + $0x10] sm:$0xff] }
 0x788   : > { %v2931_v0 = vld [vmem:[%s4228_s16 + $0x8] sm:$0xff]  ;;  %v2930_v2 = vld [vmem:[%s4228_s16] sm:$0xff] }
 0x789   : > { %v2066_v7 = vld [vmem:[%s4229_s28] sm:$0x3] }
 0x78a   : > { %v2087_v9 = vadd.f32 1.0, %v2066_v7  ;;  %v2090_v16 = vperm.slane %v2066_v7, 1  ;;  %v3096_v19 = vld [vmem:[%s4230_s11] ss:$0 sm:$0xff] }
 0x78b   : > { %2162 = vmatpush.bf16.msra.mxu0 %v2936_v53 }
 0x78c   : > { %v2088_v13 = vperm.slane %v2087_v9, 0 }
 0x78f   : > { %2163 = vmatpush.bf16.msra.mxu0 %v2935_v60 }
 0x793   : > { %2164 = vmatpush.bf16.msra.mxu0 %v2934_v1 }
 0x797   : > { %2165 = vmatpush.bf16.msra.mxu0 %v2933_v62 }
 0x79b   : > { %2166 = vmatpush.bf16.msra.mxu0 %v2932_v63 }
 0x79f   : > { %2167 = vmatpush.bf16.msra.mxu0 %v2931_v0 }
 0x7a3   : > { %2168 = vmatpush.bf16.msra.mxu0 %v2930_v2 }
 0x7f9   : > { %v2068_v56 = vpop.xlane.xlu0 %2067 }
 0x7fa   : > { %v2069_v57 = vmul.f32 %v2068_v56, %v3831_v11 }
 0x7fc   : > { %v2070_v58 = vsub.f32 %v2060_v52, %v2069_v57 }
 0x7fe   : > { %v2071_v59 = vmul.f32 %v2070_v58, %v2070_v58 }
 0x800   : > { %2072 = vadd.xlane.f32.xlu0 %v2071_v59 }
 0x873   : > { %v2073_v48 = vpop.xlane.xlu0 %2072 }
 0x874   : > { %v2074_v3 = vmul.f32 %v2073_v48, %v3831_v11 }
 0x876   : > { %v2075_v61 = vadd.f32 1e-06, %v2074_v3 }
 0x878   : > { %3097 = vrsqrt.f32 %v2075_v61  ;;  %vm2082_vm5 = vweird.f32 %v2075_v61 }
 0x87e   : > { %v3098_v4 = vpop.eup %3097 }
 0x87f   : > { %v2077_v5 = vmul.f32 %v3098_v4, %v2075_v61  ;;  %vm2083_vm4 = vweird.f32 %v3098_v4 }
 0x880   : > { %vm2084_vm6 = vmor %vm2082_vm5, %vm2083_vm4 }
 0x881   : > { %v2078_v6 = vmul.f32 %v3098_v4, %v2077_v5 }
 0x883   : > { %v2079_v8 = vmul.f32 0.5, %v2078_v6 }
 0x885   : > { %v2080_v10 = vsub.f32 1.5, %v2079_v8 }
 0x887   : > { %v2081_v12 = vmul.f32 %v3098_v4, %v2080_v10 }
 0x889   : > { %v2085_v14 = vsel %vm2084_vm6, %v3098_v4, %v2081_v12 }
 0x88a   : > { %v2086_v15 = vmul.f32 %v2085_v14, %v2070_v58 }
 0x88c   : > { %v2089_v17 = vmul.f32 %v2088_v13, %v2086_v15 }
 0x88e   : > { %v2091_v11 = vadd.f32 %v2090_v16, %v2089_v17 }
 0x890   : > { %v2092_v18 = vpack.c.bf16 %v2091_v11, %v2091_v11 }
 0x892   : > { %2169 = vmatmul.bf16.vlgmr.msra.gmra.mxu0 %v2092_v18 }
 0x90f   : > { %v2170_v20 = vpop.f32.mrf.mxu0 }
 0x910   : > { %v2171_v21 = vadd.f32 %v3096_v19, %v2170_v20 }
 0x912   : > { %2175 = vst.msk [vmem:[%s1060_s1] sm:$0xff] %vm2174_vm7, %v2171_v21 }
 0x917   : > { %v2172_v22 = vpop.f32.mrf.mxu0 }
 0x918 PF: > { %s4231_s20 = sld [smem:[#allocation25_spill]]  ;;  %s2189_s3 = sshll.u32 %s1060_s1, 4  ;;  %s2190_s3 = int_to_ptr.vmem [resolvable:$true] %s2189_s3 }
 0x919   : > { %s4232_s22 = sld [smem:[#allocation21_spill]] }
 0x91a   : > { %s4234_s4 = sld [smem:[#allocation62_spill]] }
 0x91e   : > { %s2853_s5 = sshll.u32 %s4231_s20, 3 }
 0x91f   : > { %s4236_s7 = sand.u32 1, %s4232_s22  }
 0x920   : > { %s4235_s2 = smov %s4234_s4  ;;  %s2187_s6 = scalar_lea.hbm %s4234_s4, %s2853_s5 }
 0x921   : > { %s2191_s29 = sshll.u32 %s2187_s6, 4  ;;  %s2177_s23 = scalar_lea.sflag [#allocation5], %s4236_s7  ;;  %s2192_s29 = int_to_ptr.hbm [resolvable:$true] %s2191_s29 }
 0x922   : > { %s3293_s10 = sshra.s32 %s2192_s29, 4  ;;  %s3299_s28 = scalar_lea.hbm %s4235_s2, 16  ;;  %s3294_s10 = int_to_ptr.hbm [resolvable:$true] %s3293_s10 }
 0x923   : > { %s3295_s25 = scalar_lea.hbm %s3294_s10, 8  ;;  %p3300_p1 = scmp.lt.s32.totalorder %s3294_s10, %s4235_s2 }
 0x924   : > { %p3296_p11 = scmp.ne.s32.totalorder %s3294_s10, %s3295_s25  ;;  %p3301_p4 = scmp.lt.s32.totalorder %s3299_s28, %s3295_s25 }
 0x926   : > { %p3297_p13 = pnand %p3296_p11, %p3629_p12  ;;  %p3302_p5 = por %p3301_p4, %p3300_p1 }
 0x928   : > { %p3298_p0 = pneg %p3297_p13 }
 0x92a   : > { %p3303_p3 = pnand %p3302_p5, %p3298_p0 }
 0x92c   : > { %3306 = shalt.err (!%p3303_p3)
}
 0x92d   : > { %2950 = dma.vmem_to_hbm [thread:$0]  (%p3629_p12), %s2190_s3, 128, %s2192_s29, %s2177_s23  }
 0x92e PF: > { %s4237_s1 = sld [smem:[#allocation28_spill]] }
 0x92f   : > { %s4238_s9 = sld [smem:[#allocation20_spill]] }
 0x934   : > { %p2976_p6 = scmp.ge.s32.totalorder %s4237_s1, 2 }
 0x935   : > { %s2203_s24 = sand.u32 1, %s4238_s9  }
 0x936   : > { %p2972_p7 = pnand %p2976_p6, %p3639_p2  ;;  %s2204_s13 = scalar_lea.sflag [#allocation5], %s2203_s24 }
 0x938   : > { %p2973_p9 = pneg %p2972_p7 }
 0x93a   : > { %3368 = dma.done.wait (%p2973_p9), %s2204_s13, 128  }
 0x93b   : > { %3370 = vsyncadd (%p2973_p9), %s2204_s13, 4294967168  ;;  %s47_s6 = sadd.s32 1, %s4237_s1   ;;  %s4240_s3 = sld [smem:[#allocation21_spill]] }
 0x93c   : > { %p44_p8 = scmp.ge.s32.totalorder %s47_s6, 6   ;;  %s4241_s28 = sld [smem:[#allocation22_spill]] }
 0x93d   : > { %s4242_s29 = sld [smem:[#allocation32_spill]] }
 0x93e   : > { %s4243_s30 = sld [smem:[#allocation23_spill]] }
 0x93f   : > { %s4244_s4 = sld [smem:[#allocation24_spill]] }
 0x940   : > { %s4245_s0 = sld [smem:[#allocation31_spill]]  ;;  %46 = sbr.rel (!%p44_p8) target bundleno = 39 (0x27), region = 255 }
 0x941   : > { %s4246_s23 = sld [smem:[#allocation26_spill]] }
 0x942   : > { %s4247_s1 = sld [smem:[#allocation27_spill]] }
 0x943   : > { %s4248_s5 = sld [smem:[#allocation29_spill]] }
 0x944   : > { %s4249_s24 = sld [smem:[#allocation30_spill]] }
 0x945   :  { %2210 = vsyncpa [#allocation4], 1 }
 0x946   :  { %2212 = vsyncpa [#allocation4 + $0x1], 1 }
 0x947   :  { %2213 = vsyncpa [#allocation7], 1 }
 0x948   :  { %2215 = vsyncpa [#allocation7 + $0x1], 1 }
 0x949   :  { %2216 = vsyncpa [#allocation10], 1 }
 0x94a   :  { %2218 = vsyncpa [#allocation10 + $0x1], 1 }
 0x94b   :  { %2219 = vsyncpa [#allocation13], 1 }
 0x94c   :  { %2221 = vsyncpa [#allocation13 + $0x1], 1 }
 0x94d   :  { %2222 = vsyncpa [#allocation5], 1 }
 0x94e   :  { %2224 = vsyncpa [#allocation5 + $0x1], 1 }

</bundles_post_ra>
